<compile_context>
chip_gen: v6e
topology: v6e:2x2x1
jax: 0.10.0
libtpu: 0.0.40
codegen_flags: <defaults>
</compile_context>

<pallas_src>
import math

import jax
import jax.numpy as jnp
from jax import lax
from jax.experimental import pallas as pl
from jax.experimental.pallas import tpu as pltpu


def _round_up(x: int, m: int) -> int:
    return (x + m - 1) // m * m


def _contract_fin(x_ref, w_ref, acc):
    """acc[o, t] += sum_i x_ref[i, t] * w_ref[i, o, t].

    F_in is the leading (untiled) dim of both blocks, so every iteration loads
    one contiguous lane-dense (F_out_p, tile) bf16 slab of W and one aligned
    (8, tile) f32 row-chunk of x.  Outer fori_loop bounds code size / register
    pressure; the static inner unroll of 8 keeps the FMA chain visible to the
    scheduler.  The per-row activation broadcasts along sublanes (cheap).
    """
    f_in_p = w_ref.shape[0]
    assert f_in_p % 8 == 0, f_in_p

    def chunk(c, acc):
        base = pl.multiple_of(c * 8, 8)
        x_rows = x_ref[pl.ds(base, 8), :]                 # (8, tile), aligned
        for j in range(8):                                # static inner unroll
            w = w_ref[base + j].astype(jnp.float32)       # (F_out_p, tile) slab
            acc = acc + x_rows[j:j + 1, :] * w            # sublane-broadcast FMA
        return acc

    return lax.fori_loop(0, f_in_p // 8, chunk, acc)


def _edge_scatter_kernel(dst_ref, x_ref, w_ref, mb_ref, out_ref):
    """One edge tile: messages + scatter-add into the resident node slab."""
    j = pl.program_id(1)

    @pl.when(j == 0)
    def _init():
        out_ref[...] = jnp.zeros_like(out_ref)

    tile_e = x_ref.shape[1]
    n_res = out_ref.shape[1]

    # msg_t[o, e] = (h_src[e] @ W[e] + m_bias[e])[o]
    msg_t = _contract_fin(x_ref, w_ref, mb_ref[...])      # (F_out_p, tile_e) f32

    # Scatter-add by destination node: build the (tile_e, N_p) one-hot
    # in-kernel from int32 dst indices, then one MXU matmul accumulates into
    # the resident (F_out_p, N_p) output slab.  Padded edges carry dst = N_p
    # (never matches) and all-zero messages.
    node_ids = lax.broadcasted_iota(jnp.int32, (tile_e, n_res), 1)
    onehot = (node_ids == dst_ref[...]).astype(jnp.float32)     # (tile_e, N_p)
    out_ref[...] += jnp.dot(msg_t, onehot, preferred_element_type=jnp.float32)


def _self_loop_kernel(x_ref, w_ref, hb_ref, out_ref):
    """base_t[o, v] = (feat[v] @ loop_weight[v] + h_bias[v])[o] for one tile."""
    out_ref[...] = _contract_fin(x_ref, w_ref, hb_ref[...])


def _vmem_limit(need_bytes: int) -> int:
    """Generation-aware VMEM limit: real block need + headroom, capped at HW."""
    try:
        cap = int(pltpu.get_tpu_info().vmem_capacity_bytes)
    except Exception:
        cap = 64 << 20                      # conservative fallback (v7x per-core)
    cap = (cap * 9) // 10
    assert need_bytes <= cap, (
        f"tile config needs ~{need_bytes >> 20} MiB VMEM but only "
        f"{cap >> 20} MiB available; reduce tile_e / tile_n")
    return int(min(max(need_bytes + (16 << 20), 32 << 20), cap))


def gnn_layer(feat, loop_weight, W, m_bias, h_bias, src, dst,
              *, tile_n=128, tile_e=128, num_splits=2):
    """Pallas TPU forward of GNN_Layer (2-D feat path).  Returns (N, out_feat)."""
    n, f_in = feat.shape
    e, _, f_out = W.shape
    f32 = jnp.float32

    # ---- geometry: lane dims multiples of 128, sublane dims multiples of 8 --
    f_in_p = _round_up(f_in, 8)
    f_out_p = _round_up(f_out, 128)
    tile_n = min(_round_up(max(tile_n, 128), 128), _round_up(n, 128))
    tile_e = min(_round_up(max(tile_e, 128), 128), _round_up(e, 128))
    num_splits = max(1, int(num_splits))
    n_p = _round_up(n, tile_n)
    e_p = _round_up(e, num_splits * tile_e)
    tps = e_p // (num_splits * tile_e)        # edge tiles per parallel split

    # ---- wrapper-side layout plumbing (one-time parameter re-layout) --------
    def pad_to(a, shape):
        return jnp.pad(a, [(0, s - d) for s, d in zip(shape, a.shape)])

    # Weights: F_in leading, row index (edge / node) on lanes, streamed bf16.
    w_t = pad_to(jnp.transpose(W.astype(jnp.bfloat16), (1, 2, 0)),
                 (f_in_p, f_out_p, e_p))                       # (F_in, F_out, E)
    lw_t = pad_to(jnp.transpose(loop_weight.astype(jnp.bfloat16), (1, 2, 0)),
                  (f_in_p, f_out_p, n_p))                      # (F_in, F_out, N)
    # Activations / biases stay f32 (small relative to W).
    h_src_t = pad_to(jnp.take(feat.astype(f32), src, axis=0).T, (f_in_p, e_p))
    feat_t = pad_to(feat.astype(f32).T, (f_in_p, n_p))
    mb_t = pad_to(m_bias.reshape(e, f_out).astype(f32).T, (f_out_p, e_p))
    hb_t = pad_to(h_bias.reshape(n, f_out).astype(f32).T, (f_out_p, n_p))
    # Padded edges get dst = n_p (outside the iota range) so they never land.
    dst_col = jnp.pad(dst.astype(jnp.int32), (0, e_p - e),
                      constant_values=n_p).reshape(e_p, 1)

    # ---- edge kernel: each W / h_src / m_bias / dst block DMA'd exactly once
    edge_need = 2 * (f_in_p * f_out_p * tile_e * 2    # W block (bf16), dbl-buffered
                     + f_in_p * tile_e * 4            # h_src block
                     + f_out_p * tile_e * 4           # m_bias block
                     + tile_e * 128 * 4               # dst block (lane-padded)
                     + f_out_p * n_p * 4)             # resident output slab
    edge_flops = 2 * e_p * f_out_p * (f_in_p + n_p)
    edge_bytes = (e_p * f_in_p * f_out_p * 2
                  + e_p * (f_in_p + f_out_p + 1) * 4
                  + num_splits * f_out_p * n_p * 4)

    parts = pl.pallas_call(
        _edge_scatter_kernel,
        out_shape=jax.ShapeDtypeStruct((num_splits * f_out_p, n_p), f32),
        grid=(num_splits, tps),
        in_specs=[
            pl.BlockSpec((tile_e, 1), lambda c, j: (c * tps + j, 0)),        # dst
            pl.BlockSpec((f_in_p, tile_e), lambda c, j: (0, c * tps + j)),   # h_src^T
            pl.BlockSpec((f_in_p, f_out_p, tile_e),
                         lambda c, j: (0, 0, c * tps + j)),                  # W (bf16)
            pl.BlockSpec((f_out_p, tile_e), lambda c, j: (0, c * tps + j)),  # m_bias^T
        ],
        out_specs=pl.BlockSpec((f_out_p, n_p), lambda c, j: (c, 0)),
        compiler_params=pltpu.CompilerParams(
            dimension_semantics=("parallel", "arbitrary"),
            vmem_limit_bytes=_vmem_limit(edge_need)),
        cost_estimate=pl.CostEstimate(flops=int(edge_flops), transcendentals=0,
                                      bytes_accessed=int(edge_bytes)),
    )(dst_col, h_src_t, w_t, mb_t)

    # ---- node kernel: self-loop term, loop_weight read exactly once ---------
    node_need = 2 * (f_in_p * f_out_p * tile_n * 2    # loop_weight block (bf16)
                     + f_in_p * tile_n * 4            # feat block
                     + f_out_p * tile_n * 4           # h_bias block
                     + f_out_p * tile_n * 4)          # output block
    node_flops = 2 * n_p * f_in_p * f_out_p
    node_bytes = n_p * (f_in_p * f_out_p * 2 + (f_in_p + 2 * f_out_p) * 4)

    base_t = pl.pallas_call(
        _self_loop_kernel,
        out_shape=jax.ShapeDtypeStruct((f_out_p, n_p), f32),
        grid=(n_p // tile_n,),
        in_specs=[
            pl.BlockSpec((f_in_p, tile_n), lambda i: (0, i)),                # feat^T
            pl.BlockSpec((f_in_p, f_out_p, tile_n), lambda i: (0, 0, i)),    # loop_w
            pl.BlockSpec((f_out_p, tile_n), lambda i: (0, i)),               # h_bias^T
        ],
        out_specs=pl.BlockSpec((f_out_p, tile_n), lambda i: (0, i)),
        compiler_params=pltpu.CompilerParams(
            dimension_semantics=("parallel",),
            vmem_limit_bytes=_vmem_limit(node_need)),
        cost_estimate=pl.CostEstimate(flops=int(node_flops), transcendentals=0,
                                      bytes_accessed=int(node_bytes)),
    )(feat_t, lw_t, hb_t)

    # ---- tiny XLA epilogue: sum the per-split partial slabs, add self-loop --
    agg_t = jnp.sum(parts.reshape(num_splits, f_out_p, n_p), axis=0)
    out_t = base_t + agg_t                           # (F_out_p, N_p)
    return out_t.T[:n, :f_out]


def gnn_layer_ref(feat, loop_weight, W, m_bias, h_bias, src, dst):
    """Pure-JAX reference mirroring the PyTorch forward (2-D feat path)."""
    n = feat.shape[0]
    hi = jax.lax.Precision.HIGHEST
    loop = jnp.einsum('ni,nio->no', feat, loop_weight, precision=hi)
    msg = jnp.einsum('ei,eio->eo', feat[src], W, precision=hi) + m_bias[:, 0, :]
    agg = jax.ops.segment_sum(msg, dst, num_segments=n)
    return agg + h_bias[:, 0, :] + loop


if __name__ == "__main__":
    # --- small deterministic graph + params ---------------------------------
    num_nodes, num_edges = 96, 160
    in_feat, out_feat = 64, 128

    key = jax.random.PRNGKey(0)
    k_src, k_dst, k_feat, k_loop, k_w, k_mb, k_hb = jax.random.split(key, 7)

    src = jax.random.randint(k_src, (num_edges,), 0, num_nodes, dtype=jnp.int32)
    dst = jax.random.randint(k_dst, (num_edges,), 0, num_nodes, dtype=jnp.int32)
    feat = jax.random.normal(k_feat, (num_nodes, in_feat), dtype=jnp.float32)

    # xavier_uniform_ with tanh gain on a (N, in, out) tensor (PyTorch fans).
    gain = 5.0 / 3.0
    fan_in, fan_out = in_feat * out_feat, num_nodes * out_feat
    bound_loop = gain * math.sqrt(6.0 / (fan_in + fan_out))
    loop_weight = jax.random.uniform(k_loop, (num_nodes, in_feat, out_feat),
                                     minval=-bound_loop, maxval=bound_loop,
                                     dtype=jnp.float32)
    bound_w = 1.0 / math.sqrt(in_feat)
    W = jax.random.uniform(k_w, (num_edges, in_feat, out_feat),
                           minval=-bound_w, maxval=bound_w, dtype=jnp.float32)
    # nonzero biases to exercise the bias-add paths (module inits them to 0)
    m_bias = 0.1 * jax.random.normal(k_mb, (num_edges, 1, out_feat), dtype=jnp.float32)
    h_bias = 0.1 * jax.random.normal(k_hb, (num_nodes, 1, out_feat), dtype=jnp.float32)

    # --- run kernels (edge grid = 2 parallel splits x 1 edge tile) -----------
    out = gnn_layer(feat, loop_weight, W, m_bias, h_bias, src, dst,
                    tile_n=128, tile_e=128, num_splits=2)
    out = jax.block_until_ready(out)
    assert out.shape == (num_nodes, out_feat)

    # matched-precision reference (weights rounded to bf16, f32 accumulation)
    ref_bf16w = gnn_layer_ref(feat,
                              loop_weight.astype(jnp.bfloat16).astype(jnp.float32),
                              W.astype(jnp.bfloat16).astype(jnp.float32),
                              m_bias, h_bias, src, dst)
    assert jnp.allclose(out, ref_bf16w, atol=5e-3, rtol=5e-3), \
        "mismatch vs matched-precision reference"

    # full-f32 PyTorch-semantics reference (tolerance covers bf16 weight stream)
    ref_f32 = gnn_layer_ref(feat, loop_weight, W, m_bias, h_bias, src, dst)
    assert jnp.allclose(out, ref_f32, atol=5e-2, rtol=5e-2), \
        "mismatch vs f32 reference"

    print("KERNEL_OK")
</pallas_src>

<mosaic_0001>
module attributes {stable_mosaic.version = 11 : i64} {
  func.func @_edge_scatter_kernel(%arg0: i32, %arg1: i32, %arg2: memref<128x1xi32, #tpu.memory_space<vmem>>, %arg3: memref<64x128xf32, #tpu.memory_space<vmem>>, %arg4: memref<64x128x128xbf16, #tpu.memory_space<vmem>>, %arg5: memref<128x128xf32, #tpu.memory_space<vmem>>, %arg6: memref<128x128xf32, #tpu.memory_space<vmem>>) attributes {dimension_semantics = [#tpu.dimension_semantics<parallel>, #tpu.dimension_semantics<arbitrary>], iteration_bounds = array<i64: 2, 1>, scalar_prefetch = 0 : i64, scratch_operands = 0 : i64, tpu.core_type = #tpu.core_type<tc>, window_params = [{transform_indices = @transform_0, window_bounds = array<i64: 128, 1>}, {transform_indices = @transform_1, window_bounds = array<i64: 64, 128>}, {transform_indices = @transform_2, window_bounds = array<i64: 64, 128, 128>}, {transform_indices = @transform_3, window_bounds = array<i64: 128, 128>}, {transform_indices = @transform_4, window_bounds = array<i64: 128, 128>}]} {
    %c0_i32 = arith.constant 0 : i32
    %0 = arith.cmpi eq, %arg1, %c0_i32 : i32
    %1 = arith.extui %0 : i1 to i32
    %c0_i32_0 = arith.constant 0 : i32
    %2 = arith.cmpi ne, %1, %c0_i32_0 : i32
    scf.if %2 {
      %cst_10 = arith.constant 0.000000e+00 : f32
      %16 = vector.broadcast %cst_10 : f32 to vector<128x128xf32>
      %c0_11 = arith.constant 0 : index
      %c0_12 = arith.constant 0 : index
      %17 = vector.load %arg6[%c0_11, %c0_12] : memref<128x128xf32, #tpu.memory_space<vmem>>, vector<128x128xf32>
      tpu.vector_store %arg6[%c0_11, %c0_12], %16 {strides = array<i32>} : memref<128x128xf32, #tpu.memory_space<vmem>>, vector<128x128xf32>,
    } else {
    }
    %c0 = arith.constant 0 : index
    %c0_1 = arith.constant 0 : index
    %3 = vector.load %arg5[%c0, %c0_1] : memref<128x128xf32, #tpu.memory_space<vmem>>, vector<128x128xf32>
    %c0_i32_2 = arith.constant 0 : i32
    %c8_i32 = arith.constant 8 : i32
    %4 = arith.addi %c0_i32_2, %c8_i32 : i32
    %c1_i32 = arith.constant 1 : i32
    %5 = scf.for %arg7 = %c0_i32_2 to %4 step %c1_i32 iter_args(%arg8 = %3) -> (vector<128x128xf32>)  : i32 {
      %c8_i32_10 = arith.constant 8 : i32
      %16 = arith.muli %arg7, %c8_i32_10 : i32
      %17 = tpu.assume_multiple %16, 8 : i32
      %18 = arith.index_cast %17 : i32 to index
      %c0_11 = arith.constant 0 : index
      %19 = vector.load %arg3[%18, %c0_11] : memref<64x128xf32, #tpu.memory_space<vmem>>, vector<8x128xf32>
      %c0_i32_12 = arith.constant 0 : i32
      %20 = arith.addi %17, %c0_i32_12 : i32
      %21 = arith.index_cast %20 : i32 to index
      %c0_13 = arith.constant 0 : index
      %c0_14 = arith.constant 0 : index
      %22 = vector.load %arg4[%21, %c0_13, %c0_14] : memref<64x128x128xbf16, #tpu.memory_space<vmem>>, vector<1x128x128xbf16>
      %23 = vector.shape_cast %22 : vector<1x128x128xbf16> to vector<128x128xbf16>
      %24 = arith.extf %23 : vector<128x128xbf16> to vector<128x128xf32>
      %25 = vector.extract_strided_slice %19 {offsets = [0, 0], sizes = [1, 128], strides = [1, 1]} : vector<8x128xf32> to vector<1x128xf32>
      %26 = vector.broadcast %25 : vector<1x128xf32> to vector<128x128xf32>
      %27 = arith.mulf %26, %24 : vector<128x128xf32>
      %28 = arith.addf %arg8, %27 : vector<128x128xf32>
      %c1_i32_15 = arith.constant 1 : i32
      %29 = arith.addi %17, %c1_i32_15 : i32
      %30 = arith.index_cast %29 : i32 to index
      %c0_16 = arith.constant 0 : index
      %c0_17 = arith.constant 0 : index
      %31 = vector.load %arg4[%30, %c0_16, %c0_17] : memref<64x128x128xbf16, #tpu.memory_space<vmem>>, vector<1x128x128xbf16>
      %32 = vector.shape_cast %31 : vector<1x128x128xbf16> to vector<128x128xbf16>
      %33 = arith.extf %32 : vector<128x128xbf16> to vector<128x128xf32>
      %34 = vector.extract_strided_slice %19 {offsets = [1, 0], sizes = [1, 128], strides = [1, 1]} : vector<8x128xf32> to vector<1x128xf32>
      %35 = vector.broadcast %34 : vector<1x128xf32> to vector<128x128xf32>
      %36 = arith.mulf %35, %33 : vector<128x128xf32>
      %37 = arith.addf %28, %36 : vector<128x128xf32>
      %c2_i32 = arith.constant 2 : i32
      %38 = arith.addi %17, %c2_i32 : i32
      %39 = arith.index_cast %38 : i32 to index
      %c0_18 = arith.constant 0 : index
      %c0_19 = arith.constant 0 : index
      %40 = vector.load %arg4[%39, %c0_18, %c0_19] : memref<64x128x128xbf16, #tpu.memory_space<vmem>>, vector<1x128x128xbf16>
      %41 = vector.shape_cast %40 : vector<1x128x128xbf16> to vector<128x128xbf16>
      %42 = arith.extf %41 : vector<128x128xbf16> to vector<128x128xf32>
      %43 = vector.extract_strided_slice %19 {offsets = [2, 0], sizes = [1, 128], strides = [1, 1]} : vector<8x128xf32> to vector<1x128xf32>
      %44 = vector.broadcast %43 : vector<1x128xf32> to vector<128x128xf32>
      %45 = arith.mulf %44, %42 : vector<128x128xf32>
      %46 = arith.addf %37, %45 : vector<128x128xf32>
      %c3_i32 = arith.constant 3 : i32
      %47 = arith.addi %17, %c3_i32 : i32
      %48 = arith.index_cast %47 : i32 to index
      %c0_20 = arith.constant 0 : index
      %c0_21 = arith.constant 0 : index
      %49 = vector.load %arg4[%48, %c0_20, %c0_21] : memref<64x128x128xbf16, #tpu.memory_space<vmem>>, vector<1x128x128xbf16>
      %50 = vector.shape_cast %49 : vector<1x128x128xbf16> to vector<128x128xbf16>
      %51 = arith.extf %50 : vector<128x128xbf16> to vector<128x128xf32>
      %52 = vector.extract_strided_slice %19 {offsets = [3, 0], sizes = [1, 128], strides = [1, 1]} : vector<8x128xf32> to vector<1x128xf32>
      %53 = vector.broadcast %52 : vector<1x128xf32> to vector<128x128xf32>
      %54 = arith.mulf %53, %51 : vector<128x128xf32>
      %55 = arith.addf %46, %54 : vector<128x128xf32>
      %c4_i32 = arith.constant 4 : i32
      %56 = arith.addi %17, %c4_i32 : i32
      %57 = arith.index_cast %56 : i32 to index
      %c0_22 = arith.constant 0 : index
      %c0_23 = arith.constant 0 : index
      %58 = vector.load %arg4[%57, %c0_22, %c0_23] : memref<64x128x128xbf16, #tpu.memory_space<vmem>>, vector<1x128x128xbf16>
      %59 = vector.shape_cast %58 : vector<1x128x128xbf16> to vector<128x128xbf16>
      %60 = arith.extf %59 : vector<128x128xbf16> to vector<128x128xf32>
      %61 = vector.extract_strided_slice %19 {offsets = [4, 0], sizes = [1, 128], strides = [1, 1]} : vector<8x128xf32> to vector<1x128xf32>
      %62 = vector.broadcast %61 : vector<1x128xf32> to vector<128x128xf32>
      %63 = arith.mulf %62, %60 : vector<128x128xf32>
      %64 = arith.addf %55, %63 : vector<128x128xf32>
      %c5_i32 = arith.constant 5 : i32
      %65 = arith.addi %17, %c5_i32 : i32
      %66 = arith.index_cast %65 : i32 to index
      %c0_24 = arith.constant 0 : index
      %c0_25 = arith.constant 0 : index
      %67 = vector.load %arg4[%66, %c0_24, %c0_25] : memref<64x128x128xbf16, #tpu.memory_space<vmem>>, vector<1x128x128xbf16>
      %68 = vector.shape_cast %67 : vector<1x128x128xbf16> to vector<128x128xbf16>
      %69 = arith.extf %68 : vector<128x128xbf16> to vector<128x128xf32>
      %70 = vector.extract_strided_slice %19 {offsets = [5, 0], sizes = [1, 128], strides = [1, 1]} : vector<8x128xf32> to vector<1x128xf32>
      %71 = vector.broadcast %70 : vector<1x128xf32> to vector<128x128xf32>
      %72 = arith.mulf %71, %69 : vector<128x128xf32>
      %73 = arith.addf %64, %72 : vector<128x128xf32>
      %c6_i32 = arith.constant 6 : i32
      %74 = arith.addi %17, %c6_i32 : i32
      %75 = arith.index_cast %74 : i32 to index
      %c0_26 = arith.constant 0 : index
      %c0_27 = arith.constant 0 : index
      %76 = vector.load %arg4[%75, %c0_26, %c0_27] : memref<64x128x128xbf16, #tpu.memory_space<vmem>>, vector<1x128x128xbf16>
      %77 = vector.shape_cast %76 : vector<1x128x128xbf16> to vector<128x128xbf16>
      %78 = arith.extf %77 : vector<128x128xbf16> to vector<128x128xf32>
      %79 = vector.extract_strided_slice %19 {offsets = [6, 0], sizes = [1, 128], strides = [1, 1]} : vector<8x128xf32> to vector<1x128xf32>
      %80 = vector.broadcast %79 : vector<1x128xf32> to vector<128x128xf32>
      %81 = arith.mulf %80, %78 : vector<128x128xf32>
      %82 = arith.addf %73, %81 : vector<128x128xf32>
      %c7_i32 = arith.constant 7 : i32
      %83 = arith.addi %17, %c7_i32 : i32
      %84 = arith.index_cast %83 : i32 to index
      %c0_28 = arith.constant 0 : index
      %c0_29 = arith.constant 0 : index
      %85 = vector.load %arg4[%84, %c0_28, %c0_29] : memref<64x128x128xbf16, #tpu.memory_space<vmem>>, vector<1x128x128xbf16>
      %86 = vector.shape_cast %85 : vector<1x128x128xbf16> to vector<128x128xbf16>
      %87 = arith.extf %86 : vector<128x128xbf16> to vector<128x128xf32>
      %88 = vector.extract_strided_slice %19 {offsets = [7, 0], sizes = [1, 128], strides = [1, 1]} : vector<8x128xf32> to vector<1x128xf32>
      %89 = vector.broadcast %88 : vector<1x128xf32> to vector<128x128xf32>
      %90 = arith.mulf %89, %87 : vector<128x128xf32>
      %91 = arith.addf %82, %90 : vector<128x128xf32>
      scf.yield %91 : vector<128x128xf32>
    }
    %c8_i32_3 = arith.constant 8 : i32
    %6 = tpu.iota {dimensions = array<i32: 1>} : vector<128x128xi32>
    %c0_4 = arith.constant 0 : index
    %c0_5 = arith.constant 0 : index
    %7 = vector.load %arg2[%c0_4, %c0_5] : memref<128x1xi32, #tpu.memory_space<vmem>>, vector<128x1xi32>
    %8 = vector.broadcast %7 : vector<128x1xi32> to vector<128x128xi32>
    %9 = arith.cmpi eq, %6, %8 : vector<128x128xi32>
    %10 = arith.extui %9 : vector<128x128xi1> to vector<128x128xi32>
    %11 = arith.sitofp %10 : vector<128x128xi32> to vector<128x128xf32>
    %c0_6 = arith.constant 0 : index
    %c0_7 = arith.constant 0 : index
    %12 = vector.load %arg6[%c0_6, %c0_7] : memref<128x128xf32, #tpu.memory_space<vmem>>, vector<128x128xf32>
    %cst = arith.constant dense<0.000000e+00> : vector<128x128xf32>
    %13 = tpu.matmul %5, %11, %cst {dimension_numbers = #tpu.dot_dimension_numbers<[1], [0], [0], [1], [0, 0, 1, 1], [], []>} : vector<128x128xf32>, vector<128x128xf32>, vector<128x128xf32> -> vector<128x128xf32>
    %14 = arith.addf %12, %13 : vector<128x128xf32>
    %c0_8 = arith.constant 0 : index
    %c0_9 = arith.constant 0 : index
    %15 = vector.load %arg6[%c0_8, %c0_9] : memref<128x128xf32, #tpu.memory_space<vmem>>, vector<128x128xf32>
    tpu.vector_store %arg6[%c0_8, %c0_9], %14 {strides = array<i32>} : memref<128x128xf32, #tpu.memory_space<vmem>>, vector<128x128xf32>,
    return
  }
  func.func @transform_0(%arg0: i32, %arg1: i32) -> (i32, i32) {
    %c1_i32 = arith.constant 1 : i32
    %0 = arith.muli %arg0, %c1_i32 : i32
    %1 = arith.addi %0, %arg1 : i32
    %c0_i32 = arith.constant 0 : i32
    %c0_i32_0 = arith.constant 0 : i32
    return %1, %c0_i32 : i32, i32
  }
  func.func @transform_1(%arg0: i32, %arg1: i32) -> (i32, i32) {
    %c1_i32 = arith.constant 1 : i32
    %0 = arith.muli %arg0, %c1_i32 : i32
    %1 = arith.addi %0, %arg1 : i32
    %c0_i32 = arith.constant 0 : i32
    %c0_i32_0 = arith.constant 0 : i32
    return %c0_i32, %1 : i32, i32
  }
  func.func @transform_2(%arg0: i32, %arg1: i32) -> (i32, i32, i32) {
    %c1_i32 = arith.constant 1 : i32
    %0 = arith.muli %arg0, %c1_i32 : i32
    %1 = arith.addi %0, %arg1 : i32
    %c0_i32 = arith.constant 0 : i32
    %c0_i32_0 = arith.constant 0 : i32
    %c0_i32_1 = arith.constant 0 : i32
    return %c0_i32, %c0_i32_0, %1 : i32, i32, i32
  }
  func.func @transform_3(%arg0: i32, %arg1: i32) -> (i32, i32) {
    %c1_i32 = arith.constant 1 : i32
    %0 = arith.muli %arg0, %c1_i32 : i32
    %1 = arith.addi %0, %arg1 : i32
    %c0_i32 = arith.constant 0 : i32
    %c0_i32_0 = arith.constant 0 : i32
    return %c0_i32, %1 : i32, i32
  }
  func.func @transform_4(%arg0: i32, %arg1: i32) -> (i32, i32) {
    %c0_i32 = arith.constant 0 : i32
    %c0_i32_0 = arith.constant 0 : i32
    return %arg0, %c0_i32 : i32, i32
  }
}

</mosaic_0001>

<bundles_post_ra>
// kernel: tpu_custom_call.1
= control target key start
LH: loop header
LB: loop body
LE: loop exit
PB: predicated region body
PF: predicated region fallthrough
CT: control target
= control target key end

     0   :  { %s3740_s0 = inlined_call_operand.vmem [shape: s32[256,1], index: 0, kind: input, shape index: {}]   ;;  %s3741_s1 = inlined_call_operand.hbm [shape: f32[64,256], index: 1, kind: input, shape index: {}]   ;;  %s3742_s2 = inlined_call_operand.hbm [shape: bf16[64,128,256], index: 2, kind: input, shape index: {}]   ;;  %s3743_s3 = inlined_call_operand.hbm [shape: f32[128,256], index: 3, kind: input, shape index: {}]   ;;  %s3744_s4 = inlined_call_operand.hbm [shape: f32[256,128], index: 4, kind: output, shape index: {}]  }
   0x1   :  { %3762 = sst [smem:[#allocation23_spill]] %s3741_s1 }
   0x2   :  { %3763 = sst [smem:[#allocation24_spill]] %s3742_s2 }
   0x3   :  { %9 = vsyncpa [#allocation3], 0 }
   0x4   :  { %11 = vsyncpa [#allocation3 + $0x1], 0 }
   0x5   :  { %12 = vsyncpa [#allocation6], 0 }
   0x6   :  { %14 = vsyncpa [#allocation6 + $0x1], 0 }
   0x7   :  { %15 = vsyncpa [#allocation4], 0 }
   0x8   :  { %17 = vsyncpa [#allocation4 + $0x1], 0  ;;  %s2722_s15 = smov 0   ;;  %s2724_s16 = smov 0  }
   0x9   :  { %s2726_s17 = smov 0   ;;  %s2728_s18 = smov 0  }
   0xa   :  { %s2730_s19 = smov 0   ;;  %s2732_s20 = smov 0  }
   0xb LB: > { %3764 = sst [smem:[#allocation12_spill]] %s2601_s17  ;;  %s2753_s21 = sadd.s32 4294967295, %s2613_s20   ;;  %s2613_s20 = sphi %s2732_s20, %s23_s20   ;;  %s2609_s19 = sphi %s2730_s19, %s3867_s19   ;;  %s2605_s18 = sphi %s2728_s18, %s3866_s18   ;;  %s2601_s17 = sphi %s2726_s17, %s3865_s17   ;;  %s2597_s16 = sphi %s2724_s16, %s3869_s16   ;;  %s2593_s15 = sphi %s2722_s15, %s3868_s15  }
   0xc   : > { %3765 = sst [smem:[#allocation13_spill]] %s2609_s19  ;;  %s1526_s22 = sadd.s32 4294967294, %s2613_s20  }
   0xd   : > { %3766 = sst [smem:[#allocation14_spill]] %s2613_s20  ;;  %s35_s23 = sadd.s32 1, %s2609_s19 }
   0xe   : > { %s72_s24 = sadd.s32 1, %s2601_s17  ;;  %p37_p0 = scmp.ge.s32.totalorder %s35_s23, 2 }
   0xf   : > { %p79_p1 = scmp.ne.s32.totalorder %s2601_s17, %s2597_s16  ;;  %p80_p2 = scmp.eq.s32.totalorder %s2613_s20, 0 }
  0x10   : > { %p85_p3 = scmp.ne.s32.totalorder %s2597_s16, %s2593_s15  ;;  %s3871_s23 = smov (%p37_p0, %s35_s23), 0 }
  0x11   : > { %3767 = sst [smem:[#allocation15_spill]] %s3871_s23  ;;  %p2765_p4 = por %p80_p2, %p79_p1 }
  0x12   : > { %p86_p5 = scmp.eq.s32.totalorder %s2753_s21, 0  ;;  %s69_s26 = ssub.s32 %s2609_s19, %s3871_s23 }
  0x13   : > { %p165_p6 = scmp.eq.s32.totalorder %s2753_s21, 1  ;;  %p70_p7 = scmp.eq.s32.totalorder %s69_s26, 0 }
  0x14   : > { %p2773_p8 = por %p86_p5, %p85_p3  ;;  %p171_p10 = scmp.eq.s32.totalorder %s1526_s22, 1 }
  0x15   : > { %p2777_p9 = por %p165_p6, %p79_p1  ;;  %p1528_p12 = scmp.ge.s32.totalorder %s2613_s20, 2 }
  0x16   : > { %s2782_s29 = scalar_select %p70_p7, %s2601_s17, %s72_s24  }
  0x17   : > { %p2784_p11 = por %p171_p10, %p85_p3  ;;  %p2179_p13 = scmp.lt.s32.totalorder %s2613_s20, 2 }
  0x18   : > { %3771 = sst [smem:[#allocation16_spill]] %s2782_s29  ;;  %s2791_s5 = sand.u32 1, %s2601_s17  }
  0x19   : > { %s223_s6 = sand.u32 1, %s2613_s20   ;;  %p2796_p0 = pnand %p2179_p13, %p2765_p4 }
  0x1a   : > { %s1531_s8 = sshll.u32 %s2791_s5, 12  ;;  %s1532_s9 = sshll.u32 %s2609_s19, 6 }
  0x1b   : > { %s3774_s2 = sld [smem:[#allocation24_spill]]  ;;  %s227_s13 = scalar_lea.vmem [#allocation5], %s1531_s8 }
  0x1c   : > { %s234_s14 = sshll.u32 %s227_s13, 4  ;;  %p1535_p1 = scmp.ge.s32.totalorder %s2613_s20, 1  ;;  %s235_s14 = int_to_ptr.vmem [resolvable:$true] %s234_s14 }
  0x1d   : > { %s2806_s22 = scalar_lea.sflag [#allocation6], %s223_s6  ;;  %p2379_p2 = pneg %p2796_p0 }
  0x1e   : > { %s2390_s24 = scalar_lea.vmem %s235_s14, 65536  ;;  %s2683_s25 = smov [#allocation5]  }
  0x1f   : > { %p2391_p3 = scmp.ne.s32.totalorder %s235_s14, %s2390_s24  ;;  %s2395_s26 = sshll.u32 %s2683_s25, 4  ;;  %s2396_s26 = int_to_ptr.vmem [resolvable:$false] %s2395_s26 }
  0x20   : > { %s2397_s23 = scalar_lea.vmem %s2396_s26, 131072  ;;  %p2398_p6 = scmp.lt.s32.totalorder %s235_s14, %s2396_s26 }
  0x21   : > { %s233_s12 = scalar_lea.hbm %s3774_s2, %s1532_s9  ;;  %p2393_p4 = pnand %p2391_p3, %p2379_p2 }
  0x22   : > { %p2399_p7 = scmp.lt.s32.totalorder %s2397_s23, %s2390_s24 }
  0x23   : > { %p2394_p5 = pneg %p2393_p4 }
  0x24   : > { %p2400_p10 = por %p2399_p7, %p2398_p6 }
  0x26   : > { %p2401_p13 = pnand %p2400_p10, %p2394_p5 }
  0x28   : > { %2404 = shalt.err (!%p2401_p13)
}
  0x29   : > { %s2684_s8 = smov 128   ;;  %s2685_s6 = smov 64  }
  0x2a   : > { %s2686_s9 = smov 4   ;;  %p263_p3 = scmp.lt.s32.totalorder %s2613_s20, 3 }
  0x2b   : > { %2171 = dma.hbm_to_vmem [thread:$0]  (!%p2796_p0), %s233_s12, 65536, %s235_s14, %s2806_s22, %s2684_s8, %s2685_s6, %s2686_s9  }
  0x2c   : > { %p2820_p4 = pnand %p1535_p1, %p263_p3  ;;  %s1529_s10 = sshll.u32 %s2791_s5, 6 }
  0x2d   : > { %s1530_s11 = sshll.u32 %s2609_s19, 7  ;;  %s3776_s1 = sld [smem:[#allocation23_spill]] }
  0x2e   : > { %s206_s26 = scalar_lea.vmem [#allocation2], %s1529_s10  ;;  %s203_s29 = scalar_lea.sflag [#allocation3], %s2791_s5 }
  0x2f   : > { %s213_s2 = sshll.u32 %s206_s26, 4  ;;  %s2687_s12 = smov [#allocation2]   ;;  %s214_s2 = int_to_ptr.vmem [resolvable:$true] %s213_s2 }
  0x30   : > { %s2418_s17 = scalar_lea.vmem %s214_s2, 1024  ;;  %s2423_s14 = sshll.u32 %s2687_s12, 4  ;;  %s2424_s14 = int_to_ptr.vmem [resolvable:$false] %s2423_s14 }
  0x31   : > { %p2419_p5 = scmp.ne.s32.totalorder %s214_s2, %s2418_s17  ;;  %s2425_s6 = scalar_lea.vmem %s2424_s14, 2048 }
  0x32   : > { %p2426_p1 = scmp.lt.s32.totalorder %s214_s2, %s2424_s14  ;;  %p2427_p10 = scmp.lt.s32.totalorder %s2425_s6, %s2418_s17 }
  0x33   : > { %s212_s25 = scalar_lea.hbm %s3776_s1, %s1530_s11  ;;  %p2421_p6 = pnand %p2419_p5, %p2379_p2 }
  0x34   : > { %p2428_p13 = por %p2427_p10, %p2426_p1 }
  0x35   : > { %p2422_p7 = pneg %p2421_p6 }
  0x37   : > { %p2429_p3 = pnand %p2428_p13, %p2422_p7 }
  0x39   : > { %2432 = shalt.err (!%p2429_p3)
}
  0x3a   : > { %s2688_s9 = smov 256   ;;  %s2689_s10 = smov 8  }
  0x3b   : > { %2168 = dma.hbm_to_vmem [thread:$0]  (!%p2796_p0), %s212_s25, 1024, %s214_s2, %s203_s29, %s2688_s9, %s2684_s8, %s2689_s10  }
  0x3c   : > { %s1533_s13 = sshll.u32 %s2791_s5, 7  ;;  %s254_s12 = scalar_lea.hbm %s3743_s3, %s1530_s11 }
  0x3d   : > { %s248_s1 = scalar_lea.vmem [#allocation7], %s1533_s13  ;;  %s2690_s14 = smov [#allocation7]  }
  0x3e   : > { %s255_s19 = sshll.u32 %s248_s1, 4  ;;  %s2451_s6 = sshll.u32 %s2690_s14, 4  ;;  %s256_s19 = int_to_ptr.vmem [resolvable:$true] %s255_s19  ;;  %s2452_s6 = int_to_ptr.vmem [resolvable:$false] %s2451_s6 }
  0x3f   : > { %s2446_s17 = scalar_lea.vmem %s256_s19, 2048  ;;  %s2453_s20 = scalar_lea.vmem %s2452_s6, 4096 }
  0x40   : > { %p2447_p5 = scmp.ne.s32.totalorder %s256_s19, %s2446_s17  ;;  %p2454_p1 = scmp.lt.s32.totalorder %s256_s19, %s2452_s6 }
  0x41   : > { %p2455_p10 = scmp.lt.s32.totalorder %s2453_s20, %s2446_s17 }
  0x42   : > { %p2449_p6 = pnand %p2447_p5, %p2379_p2 }
  0x43   : > { %p2456_p13 = por %p2455_p10, %p2454_p1 }
  0x44   : > { %p2450_p7 = pneg %p2449_p6 }
  0x46   : > { %p2457_p3 = pnand %p2456_p13, %p2450_p7 }
  0x48   : > { %2460 = shalt.err (!%p2457_p3)
}
  0x49   : > { %2174 = dma.hbm_to_vmem [thread:$0]  (!%p2796_p0), %s254_s12, 2048, %s256_s19, %s2806_s22, %s2688_s9, %s2684_s8, %s2689_s10  }
  0x4a   : > { %267 = sbr.rel (%p2820_p4) target bundleno = 590 (0x24e), region = 36  ;;  %s2850_s1 = sand.u32 (!%p2820_p4), 1, %s2597_s16  }
  0x4b   : > { %s1536_s2 = sshll.u32 (!%p2820_p4), %s2850_s1, 6  ;;  %s270_s29 = scalar_lea.sflag (!%p2820_p4), [#allocation3], %s2850_s1 }
  0x4c   : > { %s2854_s20 = scalar_lea.vmem (!%p2820_p4), [#allocation2], %s1536_s2 }
  0x4f   : > { %2580 = dma.done.wait (%p2773_p8), %s270_s29, 1024  }
  0x50   : > { %2582 = vsyncadd (%p2773_p8), %s270_s29, 4294966272  ;;  %s278_s19 = sand.u32 1, %s2753_s21   ;;  %s1537_s5 = sshll.u32 %s2850_s1, 12 }
  0x51   : > { %s279_s7 = scalar_lea.sflag [#allocation6], %s278_s19  ;;  %s2862_s22 = scalar_lea.vmem [#allocation5], %s1537_s5 }
  0x52   : > { %2584 = dma.done.wait (%p2773_p8), %s279_s7, 67584  }
  0x53   : > { %2586 = vsyncadd (%p2773_p8), %s279_s7, 4294899712  ;;  %s1538_s8 = sshll.u32 %s2850_s1, 7  ;;  %s1540_s23 = sshll.u32 %s2605_s18, 4  ;;  %v2691_v0 = vmov 0.0  }
  0x54   : > { %p2870_p0 = scmp.lt.s32.totalorder %s1540_s23, 31  ;;  %s2874_s25 = scalar_lea.vmem [#allocation8], %s1538_s8 }
  0x55   : > { %348 = vst [vmem:[%s2874_s25] sm:$0xff] %v2691_v0  ;;  %349 = vst [vmem:[%s2874_s25 + $0x8] sm:$0xff] %v2691_v0  ;;  %s291_s13 = scalar_lea.vmem [#allocation7], %s1538_s8  ;;  %s2931_s24 = smov 0  }
  0x56   : > { %350 = vst [vmem:[%s2874_s25 + $0x10] sm:$0xff] %v2691_v0  ;;  %351 = vst [vmem:[%s2874_s25 + $0x18] sm:$0xff] %v2691_v0  ;;  %s3873_s23 = smov (!%p2870_p0, %s1540_s23), 31  ;;  %v364_v1 = vld [vmem:[%s291_s13] sm:$0xff]   ;;  %v365_v2 = vld [vmem:[%s291_s13 + $0x8] sm:$0xff]  }
  0x57   : > { %352 = vst [vmem:[%s2874_s25 + $0x20] sm:$0xff] %v2691_v0  ;;  %353 = vst [vmem:[%s2874_s25 + $0x28] sm:$0xff] %v2691_v0  ;;  %s1541_s21 = sshll.u32 %s3873_s23, 3  ;;  %v366_v3 = vld [vmem:[%s291_s13 + $0x10] sm:$0xff]   ;;  %v367_v4 = vld [vmem:[%s291_s13 + $0x18] sm:$0xff]  }
  0x58   : > { %354 = vst [vmem:[%s2874_s25 + $0x30] sm:$0xff] %v2691_v0  ;;  %355 = vst [vmem:[%s2874_s25 + $0x38] sm:$0xff] %v2691_v0  ;;  %s2897_s10 = scalar_lea.vmem %s3740_s0, %s1541_s21  ;;  %v368_v5 = vld [vmem:[%s291_s13 + $0x20] sm:$0xff]   ;;  %v369_v6 = vld [vmem:[%s291_s13 + $0x28] sm:$0xff]  }
  0x59   : > { %356 = vst [vmem:[%s2874_s25 + $0x40] sm:$0xff] %v2691_v0  ;;  %357 = vst [vmem:[%s2874_s25 + $0x48] sm:$0xff] %v2691_v0  ;;  %v370_v7 = vld [vmem:[%s291_s13 + $0x30] sm:$0xff]   ;;  %v371_v8 = vld [vmem:[%s291_s13 + $0x38] sm:$0xff]  }
  0x5a   : > { %358 = vst [vmem:[%s2874_s25 + $0x50] sm:$0xff] %v2691_v0  ;;  %359 = vst [vmem:[%s2874_s25 + $0x58] sm:$0xff] %v2691_v0  ;;  %v372_v9 = vld [vmem:[%s291_s13 + $0x40] sm:$0xff]   ;;  %v373_v10 = vld [vmem:[%s291_s13 + $0x48] sm:$0xff]  }
  0x5b   : > { %360 = vst [vmem:[%s2874_s25 + $0x60] sm:$0xff] %v2691_v0  ;;  %361 = vst [vmem:[%s2874_s25 + $0x68] sm:$0xff] %v2691_v0  ;;  %v374_v11 = vld [vmem:[%s291_s13 + $0x50] sm:$0xff]   ;;  %v375_v12 = vld [vmem:[%s291_s13 + $0x58] sm:$0xff]  }
  0x5c   : > { %362 = vst [vmem:[%s2874_s25 + $0x70] sm:$0xff] %v2691_v0  ;;  %363 = vst [vmem:[%s2874_s25 + $0x78] sm:$0xff] %v2691_v0  ;;  %v376_v13 = vld [vmem:[%s291_s13 + $0x60] sm:$0xff]   ;;  %v377_v14 = vld [vmem:[%s291_s13 + $0x68] sm:$0xff]  }
  0x5d   : > { %v378_v15 = vld [vmem:[%s291_s13 + $0x70] sm:$0xff]   ;;  %v379_v16 = vld [vmem:[%s291_s13 + $0x78] sm:$0xff]  }
  0x5e LB: >> { %s1709_s26 = sshll.u32 %s2681_s24, 9  ;;  %s1542_s17 = sshll.u32 %s2681_s24, 3  ;;  %v3750_v30 = vlaneseq  ;;  %s2681_s24 = sphi %s2931_s24, %s385_s24   ;;  %v2677_v1 = vphi %v364_v1, %v3861_v1   ;;  %v2673_v2 = vphi %v365_v2, %v3860_v2   ;;  %v2669_v3 = vphi %v366_v3, %v3859_v3   ;;  %v2665_v4 = vphi %v367_v4, %v3858_v4   ;;  %v2661_v5 = vphi %v368_v5, %v3857_v5   ;;  %v2657_v6 = vphi %v369_v6, %v3856_v6   ;;  %v2653_v7 = vphi %v370_v7, %v3855_v7   ;;  %v2649_v8 = vphi %v371_v8, %v3854_v8   ;;  %v2645_v9 = vphi %v372_v9, %v3853_v9   ;;  %v2641_v10 = vphi %v373_v10, %v3852_v10   ;;  %v2637_v11 = vphi %v374_v11, %v3851_v11   ;;  %v2633_v12 = vphi %v375_v12, %v3850_v12   ;;  %v2629_v13 = vphi %v376_v13, %v3849_v13   ;;  %v2625_v14 = vphi %v377_v14, %v3848_v14   ;;  %v2621_v15 = vphi %v378_v15, %v3847_v15   ;;  %v2617_v16 = vphi %v379_v16, %v3846_v16  }
  0x5f   : >> { %s2986_s12 = scalar_lea.vmem %s2862_s22, %s1709_s26 [#allocation5]  ;;  %s403_s14 = scalar_lea.vmem %s2854_s20, %s1542_s17 [#allocation2] }
  0x60   : >> { %v2989_v17 = vld [vmem:[%s2986_s12] sm:$0xff]   ;;  %v2992_v18 = vld [vmem:[%s2986_s12 + $0x8] sm:$0xff]   ;;  %v2995_v19 = vld [vmem:[%s2986_s12 + $0x10] sm:$0xff]   ;;  %v3033_v40 = vshrl.u32 %v3750_v30, 7  ;;  %s385_s24 = sadd.s32 1, %s2681_s24  }
  0x61   : >> { %v2999_v20 = vld [vmem:[%s2986_s12 + $0x18] sm:$0xff]   ;;  %v3002_v21 = vld [vmem:[%s2986_s12 + $0x20] sm:$0xff]   ;;  %v1720_v22 = vunpack.c.l.bf16 %v2989_v17  ;;  %v1721_v23 = vunpack.c.h.bf16 %v2989_v17  ;;  %v3007_v24 = vld [vmem:[%s2986_s12 + $0x28] sm:$0xff]   ;;  %v1724_v25 = vunpack.c.l.bf16 %v2992_v18  ;;  %v1725_v26 = vunpack.c.h.bf16 %v2992_v18  ;;  %p3486_p8 = scmp.ge.s32.totalorder %s385_s24, 8  }
  0x62   : >> { %v1728_v27 = vunpack.c.l.bf16 %v2995_v19  ;;  %v3013_v28 = vld [vmem:[%s2986_s12 + $0x30] sm:$0xff]   ;;  %v3016_v29 = vld [vmem:[%s2986_s12 + $0x38] sm:$0xff]   ;;  %v1729_v31 = vunpack.c.h.bf16 %v2995_v19  ;;  %v1732_v32 = vunpack.c.l.bf16 %v2999_v20  ;;  %v1733_v33 = vunpack.c.h.bf16 %v2999_v20  ;;  %v3024_v35 = vld [vmem:[%s2986_s12 + $0x40] sm:$0xff]   ;;  %s1717_s2 = sshll.u32 (%p3486_p8), %s2605_s18, 11  ;;  %s1301_s29 = sshll.u32 (%p3486_p8), %s2874_s25, 4  ;;  %s3688_s29 = int_to_ptr.vmem [resolvable:$true] %s1301_s29 }
  0x63   : >> { %v1736_v34 = vunpack.c.l.bf16 %v3002_v21  ;;  %v3027_v36 = vld [vmem:[%s2986_s12 + $0x48] sm:$0xff]   ;;  %v1737_v37 = vunpack.c.h.bf16 %v3002_v21  ;;  %v1740_v38 = vunpack.c.l.bf16 %v3007_v24  ;;  %v1741_v39 = vunpack.c.h.bf16 %v3007_v24  ;;  %v3036_v41 = vld [vmem:[%s2986_s12 + $0x50] sm:$0xff]   ;;  %v3043_v46 = vld [vmem:[%s2986_s12 + $0x58] sm:$0xff]   ;;  %s3686_s5 = scalar_lea.hbm (%p3486_p8), %s3744_s4, %s1717_s2  ;;  %s1288_s18 = scalar_lea.sflag (%p3486_p8), [#allocation4], %s2850_s1 }
  0x64   : >> { %v1744_v42 = vunpack.c.l.bf16 %v3013_v28  ;;  %v1745_v43 = vunpack.c.h.bf16 %v3013_v28  ;;  %v1748_v44 = vunpack.c.l.bf16 %v3016_v29  ;;  %v1749_v45 = vunpack.c.h.bf16 %v3016_v29  ;;  %v3046_v47 = vld [vmem:[%s2986_s12 + $0x60] sm:$0xff]   ;;  %v3055_v53 = vld [vmem:[%s2986_s12 + $0x68] sm:$0xff]   ;;  %v3058_v54 = vld [vmem:[%s2986_s12 + $0x70] sm:$0xff]   ;;  %s2461_s7 = scalar_lea.vmem (%p3486_p8), %s3688_s29, 2048  ;;  %s2694_s22 = smov (%p3486_p8), [#allocation8]  }
  0x65   : >> { %v3048_v48 = vld [vmem:[%s403_s14] sm:$0xff]  ;;  %v442_v49 = vsub.s32 0, %v3033_v40  ;;  %v3064_v58 = vld [vmem:[%s2986_s12 + $0x78] sm:$0xff]   ;;  %v514_v59 = vsub.s32 1, %v3033_v40  ;;  %v3075_v20 = vld [vmem:[%s2986_s12 + $0x88] sm:$0xff]   ;;  %v1772_v24 = vunpack.c.l.bf16 %v3055_v53  ;;  %v1773_v28 = vunpack.c.h.bf16 %v3055_v53  ;;  %p2462_p2 = scmp.ne.s32.totalorder (%p3486_p8), %s3688_s29, %s2461_s7  ;;  %s2465_s8 = sshll.u32 (%p3486_p8), %s2694_s22, 4  ;;  %s2466_s8 = int_to_ptr.vmem [resolvable:$false] %s2465_s8 }
  0x66   : >> { %3778 = vst [vmem:[#allocation17_spill] sm:$0xff] %v3048_v48  ;;  %v3068_v60 = vld [vmem:[%s2986_s12 + $0x80] sm:$0xff]   ;;  %3780 = vst [vmem:[#allocation19_spill] sm:$0xff] %v3075_v20  ;;  %v1776_v29 = vunpack.c.l.bf16 %v3058_v54  ;;  %v3082_v30 = vld [vmem:[%s2986_s12 + $0x90] sm:$0xff]   ;;  %v1777_v62 = vunpack.c.h.bf16 %v3058_v54  ;;  %v1780_v63 = vunpack.c.l.bf16 %v3064_v58  ;;  %v1781_v0 = vunpack.c.h.bf16 %v3064_v58  ;;  %s2467_s23 = scalar_lea.vmem (%p3486_p8), %s2466_s8, 4096  ;;  %p2468_p6 = scmp.lt.s32.totalorder (%p3486_p8), %s3688_s29, %s2466_s8 }
  0x67   : >> { %3779 = vst [vmem:[#allocation18_spill] sm:$0xff] %v3068_v60  ;;  %v443_v21 = vrot.slane %v3048_v48, %v442_v49  ;;  %3781 = vst [vmem:[#allocation20_spill] sm:$0xff] %v3082_v30  ;;  %v3085_v57 = vld [vmem:[%s2986_s12 + $0x98] sm:$0xff]   ;;  %v3092_v56 = vld [vmem:[%s2986_s12 + $0xa0] sm:$0xff]   ;;  %v515_v49 = vrot.slane %v3048_v48, %v514_v59  ;;  %p2463_p4 = pnand (%p3486_p8), %p2462_p2, %p2777_p9  ;;  %p2469_p7 = scmp.lt.s32.totalorder (%p3486_p8), %s2467_s23, %s2461_s7 }
  0x68   : >> { %3782 = vst [vmem:[#allocation21_spill] sm:$0xff] %v3085_v57  ;;  %3783 = vst [vmem:[#allocation22_spill] sm:$0xff] %v3092_v56 }
  0x69   : >> { %v444_v61 = vmul.f32 %v1720_v22, %v443_v21  ;;  %v445_v59 = vmul.f32 %v1721_v23, %v443_v21  ;;  %v446_v52 = vmul.f32 %v1724_v25, %v443_v21  ;;  %v447_v54 = vmul.f32 %v1725_v26, %v443_v21  ;;  %p2464_p5 = pneg (%p3486_p8), %p2463_p4  ;;  %p2470_p1 = por (%p3486_p8), %p2469_p7, %p2468_p6 }
  0x6a   : >> { %v448_v50 = vmul.f32 %v1728_v27, %v443_v21  ;;  %v449_v58 = vmul.f32 %v1729_v31, %v443_v21  ;;  %v450_v51 = vmul.f32 %v1732_v32, %v443_v21  ;;  %v451_v57 = vmul.f32 %v1733_v33, %v443_v21 }
  0x6b   : >> { %v452_v22 = vmul.f32 %v1736_v34, %v443_v21  ;;  %v453_v30 = vmul.f32 %v1737_v37, %v443_v21  ;;  %v454_v17 = vmul.f32 %v1740_v38, %v443_v21  ;;  %v455_v23 = vmul.f32 %v1741_v39, %v443_v21  ;;  %p2471_p10 = pnand (%p3486_p8), %p2470_p1, %p2464_p5 }
  0x6c   : >> { %v456_v20 = vmul.f32 %v1744_v42, %v443_v21  ;;  %v457_v53 = vmul.f32 %v1745_v43, %v443_v21  ;;  %v458_v60 = vmul.f32 %v1748_v44, %v443_v21  ;;  %v459_v55 = vmul.f32 %v1749_v45, %v443_v21 }
  0x6d   : >> { %v460_v56 = vadd.f32 %v2677_v1, %v444_v61  ;;  %v461_v25 = vadd.f32 %v2673_v2, %v445_v59  ;;  %v462_v18 = vadd.f32 %v2669_v3, %v446_v52  ;;  %v463_v19 = vadd.f32 %v2665_v4, %v447_v54  ;;  %v1994_v54 = vld [vmem:[%s2986_s12 + $0xa8] sm:$0xff]   ;;  %v1995_v59 = vld [vmem:[%s2986_s12 + $0xb0] sm:$0xff]  }
  0x6e   : >> { %v464_v26 = vadd.f32 %v2661_v5, %v448_v50  ;;  %v465_v27 = vadd.f32 %v2657_v6, %v449_v58  ;;  %v466_v31 = vadd.f32 %v2653_v7, %v450_v51  ;;  %v467_v32 = vadd.f32 %v2649_v8, %v451_v57 }
  0x6f   : >> { %v468_v33 = vadd.f32 %v2645_v9, %v452_v22  ;;  %v469_v34 = vadd.f32 %v2641_v10, %v453_v30  ;;  %v470_v1 = vadd.f32 %v2637_v11, %v454_v17  ;;  %v471_v2 = vadd.f32 %v2633_v12, %v455_v23 }
  0x70   : >> { %v472_v3 = vadd.f32 %v2629_v13, %v456_v20  ;;  %v473_v4 = vadd.f32 %v2625_v14, %v457_v53  ;;  %v474_v5 = vadd.f32 %v2621_v15, %v458_v60  ;;  %v475_v6 = vadd.f32 %v2617_v16, %v459_v55 }
  0x71   : >> { %v3784_v7 = vunpack.c.l.bf16 %v3024_v35  ;;  %v3785_v8 = vunpack.c.h.bf16 %v3024_v35  ;;  %v3786_v10 = vunpack.c.l.bf16 %v3027_v36  ;;  %v3787_v11 = vunpack.c.h.bf16 %v3027_v36 }
  0x72   : >> { %v3788_v13 = vunpack.c.l.bf16 %v3036_v41  ;;  %v3789_v14 = vunpack.c.h.bf16 %v3036_v41  ;;  %v3790_v16 = vunpack.c.l.bf16 %v3043_v46  ;;  %v3791_v42 = vunpack.c.h.bf16 %v3043_v46 }
  0x73   : >> { %v516_v37 = vmul.f32 %v3784_v7, %v515_v49  ;;  %v517_v9 = vmul.f32 %v3785_v8, %v515_v49  ;;  %v518_v30 = vmul.f32 %v3786_v10, %v515_v49  ;;  %v519_v12 = vmul.f32 %v3787_v11, %v515_v49  ;;  %v2003_v10 = vld [vmem:[%s2986_s12 + $0xf0] sm:$0xff]  }
  0x74   : >> { %v520_v38 = vmul.f32 %v3788_v13, %v515_v49  ;;  %v521_v15 = vmul.f32 %v3789_v14, %v515_v49  ;;  %v522_v39 = vmul.f32 %v3790_v16, %v515_v49  ;;  %v523_v35 = vmul.f32 %v3791_v42, %v515_v49  ;;  %v3797_v42 = vld [vmem:[#allocation19_spill] sm:$0xff] }
  0x75   : >> { %v3792_v43 = vunpack.c.l.bf16 %v3046_v47  ;;  %v3793_v45 = vunpack.c.h.bf16 %v3046_v47  ;;  %v526_v50 = vmul.f32 %v1772_v24, %v515_v49  ;;  %v527_v51 = vmul.f32 %v1773_v28, %v515_v49 }
  0x76   : >> { %v528_v52 = vmul.f32 %v1776_v29, %v515_v49  ;;  %v529_v55 = vmul.f32 %v1777_v62, %v515_v49  ;;  %v530_v41 = vmul.f32 %v1780_v63, %v515_v49  ;;  %v531_v57 = vmul.f32 %v1781_v0, %v515_v49  ;;  %v1996_v29 = vld [vmem:[%s2986_s12 + $0xb8] sm:$0xff]  }
  0x77   : >> { %v524_v44 = vmul.f32 %v3792_v43, %v515_v49  ;;  %v525_v36 = vmul.f32 %v3793_v45, %v515_v49  ;;  %v532_v60 = vadd.f32 %v516_v37, %v460_v56  ;;  %v533_v61 = vadd.f32 %v517_v9, %v461_v25  ;;  %v3155_v49 = vld [vmem:[%s2986_s12 + $0xc0] sm:$0xff]  }
  0x78   : >> { %v534_v46 = vadd.f32 %v518_v30, %v462_v18  ;;  %v535_v20 = vadd.f32 %v519_v12, %v463_v19  ;;  %v536_v21 = vadd.f32 %v520_v38, %v464_v26  ;;  %v537_v53 = vadd.f32 %v521_v15, %v465_v27  ;;  %v3158_v18 = vld [vmem:[%s2986_s12 + $0xc8] sm:$0xff]   ;;  %v3161_v19 = vld [vmem:[%s2986_s12 + $0xd0] sm:$0xff]  }
  0x79   : >> { %v538_v58 = vadd.f32 %v522_v39, %v466_v31  ;;  %v539_v47 = vadd.f32 %v523_v35, %v467_v32  ;;  %v540_v24 = vadd.f32 %v524_v44, %v468_v33  ;;  %v586_v28 = vsub.s32 2, %v3033_v40  ;;  %v3165_v33 = vld [vmem:[%s2986_s12 + $0xd8] sm:$0xff]   ;;  %v3794_v12 = vld [vmem:[#allocation18_spill] sm:$0xff] }
  0x7a   : >> { %v541_v62 = vadd.f32 %v525_v36, %v469_v34  ;;  %v542_v63 = vadd.f32 %v526_v50, %v470_v1  ;;  %v543_v56 = vadd.f32 %v527_v51, %v471_v2  ;;  %v544_v0 = vadd.f32 %v528_v52, %v472_v3  ;;  %v3168_v34 = vld [vmem:[%s2986_s12 + $0xe0] sm:$0xff]   ;;  %v3800_v36 = vld [vmem:[#allocation20_spill] sm:$0xff] }
  0x7b   : >> { %v545_v22 = vadd.f32 %v529_v55, %v473_v4  ;;  %v546_v17 = vadd.f32 %v530_v41, %v474_v5  ;;  %v547_v23 = vadd.f32 %v531_v57, %v475_v6  ;;  %v1804_v25 = vunpack.c.l.bf16 %v1994_v54  ;;  %v3173_v5 = vld [vmem:[%s2986_s12 + $0xe8] sm:$0xff]   ;;  %v3803_v41 = vld [vmem:[#allocation21_spill] sm:$0xff] }
  0x7c   : >> { %v1805_v26 = vunpack.c.h.bf16 %v1994_v54  ;;  %v1808_v27 = vunpack.c.l.bf16 %v1995_v59  ;;  %v1809_v31 = vunpack.c.h.bf16 %v1995_v59  ;;  %v587_v32 = vrot.slane %v3048_v48, %v586_v28 }
  0x7d   : >> { %v1812_v1 = vunpack.c.l.bf16 %v1996_v29  ;;  %v1813_v2 = vunpack.c.h.bf16 %v1996_v29  ;;  %v1816_v3 = vunpack.c.l.bf16 %v3155_v49  ;;  %v1817_v4 = vunpack.c.h.bf16 %v3155_v49  ;;  %v3806_v29 = vld [vmem:[#allocation22_spill] sm:$0xff] }
  0x7e   : >> { %v1820_v6 = vunpack.c.l.bf16 %v3158_v18  ;;  %v1821_v7 = vunpack.c.h.bf16 %v3158_v18  ;;  %v1824_v37 = vunpack.c.l.bf16 %v3161_v19  ;;  %v1825_v8 = vunpack.c.h.bf16 %v3161_v19 }
  0x7f   : >> { %v1828_v9 = vunpack.c.l.bf16 %v3165_v33  ;;  %v3795_v13 = vunpack.c.l.bf16 %v3794_v12  ;;  %v3796_v14 = vunpack.c.h.bf16 %v3794_v12  ;;  %v3798_v35 = vunpack.c.l.bf16 %v3797_v42 }
  0x80   : >> { %v3799_v44 = vunpack.c.h.bf16 %v3797_v42  ;;  %v3801_v50 = vunpack.c.l.bf16 %v3800_v36  ;;  %v3802_v52 = vunpack.c.h.bf16 %v3800_v36  ;;  %v3804_v57 = vunpack.c.l.bf16 %v3803_v41 }
  0x81   : >> { %v588_v38 = vmul.f32 %v3795_v13, %v587_v32  ;;  %v589_v15 = vmul.f32 %v3796_v14, %v587_v32  ;;  %v590_v43 = vmul.f32 %v3798_v35, %v587_v32  ;;  %v3805_v59 = vunpack.c.h.bf16 %v3803_v41 }
  0x82   : >> { %v591_v45 = vmul.f32 %v3799_v44, %v587_v32  ;;  %v592_v51 = vmul.f32 %v3801_v50, %v587_v32  ;;  %v593_v55 = vmul.f32 %v3802_v52, %v587_v32  ;;  %v594_v54 = vmul.f32 %v3804_v57, %v587_v32 }
  0x83   : >> { %v595_v28 = vmul.f32 %v3805_v59, %v587_v32  ;;  %v3807_v12 = vunpack.c.l.bf16 %v3806_v29  ;;  %v3808_v14 = vunpack.c.h.bf16 %v3806_v29  ;;  %v598_v35 = vmul.f32 %v1804_v25, %v587_v32 }
  0x84   : >> { %v599_v44 = vmul.f32 %v1805_v26, %v587_v32  ;;  %v600_v50 = vmul.f32 %v1808_v27, %v587_v32  ;;  %v601_v39 = vmul.f32 %v1809_v31, %v587_v32  ;;  %v602_v36 = vmul.f32 %v1812_v1, %v587_v32 }
  0x85   : >> { %v596_v13 = vmul.f32 %v3807_v12, %v587_v32  ;;  %v597_v42 = vmul.f32 %v3808_v14, %v587_v32  ;;  %v603_v52 = vmul.f32 %v1813_v2, %v587_v32  ;;  %v604_v16 = vadd.f32 %v588_v38, %v532_v60  ;;  %v2004_v14 = vld [vmem:[%s2986_s12 + $0xf8] sm:$0xff]   ;;  %v3209_v32 = vld [vmem:[%s2986_s12 + $0x100] sm:$0xff]  }
  0x86   : >> { %v605_v57 = vadd.f32 %v589_v15, %v533_v61  ;;  %v606_v41 = vadd.f32 %v590_v43, %v534_v46  ;;  %v607_v11 = vadd.f32 %v591_v45, %v535_v20  ;;  %v608_v59 = vadd.f32 %v592_v51, %v536_v21  ;;  %v3212_v46 = vld [vmem:[%s2986_s12 + $0x108] sm:$0xff]   ;;  %v3232_v15 = vld [vmem:[%s2986_s12 + $0x130] sm:$0xff]   ;;  %v2012_v45 = vld [vmem:[%s2986_s12 + $0x138] sm:$0xff]  }
  0x87   : >> { %v609_v30 = vadd.f32 %v593_v55, %v537_v53  ;;  %v610_v12 = vadd.f32 %v594_v54, %v538_v58  ;;  %v611_v29 = vadd.f32 %v595_v28, %v539_v47  ;;  %v612_v25 = vadd.f32 %v596_v13, %v540_v24  ;;  %v3215_v47 = vld [vmem:[%s2986_s12 + $0x110] sm:$0xff]   ;;  %v3218_v24 = vld [vmem:[%s2986_s12 + $0x118] sm:$0xff]  }
  0x88   : >> { %v658_v26 = vsub.s32 3, %v3033_v40  ;;  %v613_v27 = vadd.f32 %v597_v42, %v541_v62  ;;  %v614_v31 = vadd.f32 %v598_v35, %v542_v63  ;;  %v615_v60 = vadd.f32 %v599_v44, %v543_v56  ;;  %v3222_v56 = vld [vmem:[%s2986_s12 + $0x120] sm:$0xff]  }
  0x89   : >> { %v616_v61 = vadd.f32 %v600_v50, %v544_v0  ;;  %v617_v20 = vadd.f32 %v601_v39, %v545_v22  ;;  %v618_v21 = vadd.f32 %v602_v36, %v546_v17  ;;  %v619_v53 = vadd.f32 %v603_v52, %v547_v23  ;;  %v3225_v0 = vld [vmem:[%s2986_s12 + $0x128] sm:$0xff]  }
  0x8a   : >> { %v1840_v58 = vunpack.c.l.bf16 %v2003_v10  ;;  %v1841_v1 = vunpack.c.h.bf16 %v2003_v10  ;;  %v1844_v62 = vunpack.c.l.bf16 %v2004_v14  ;;  %v1845_v2 = vunpack.c.h.bf16 %v2004_v14 }
  0x8b   : >> { %v659_v63 = vrot.slane %v3048_v48, %v658_v26  ;;  %v1848_v38 = vunpack.c.l.bf16 %v3209_v32  ;;  %v1849_v22 = vunpack.c.h.bf16 %v3209_v32  ;;  %v1852_v17 = vunpack.c.l.bf16 %v3212_v46 }
  0x8c   : >> { %v1853_v23 = vunpack.c.h.bf16 %v3212_v46  ;;  %v1856_v10 = vunpack.c.l.bf16 %v3215_v47  ;;  %v1857_v39 = vunpack.c.h.bf16 %v3215_v47  ;;  %v1860_v43 = vunpack.c.l.bf16 %v3218_v24 }
  0x8d   : >> { %v660_v13 = vmul.f32 %v1816_v3, %v659_v63  ;;  %v661_v42 = vmul.f32 %v1817_v4, %v659_v63  ;;  %v662_v50 = vmul.f32 %v1820_v6, %v659_v63  ;;  %v663_v36 = vmul.f32 %v1821_v7, %v659_v63 }
  0x8e   : >> { %v664_v52 = vmul.f32 %v1824_v37, %v659_v63  ;;  %v665_v14 = vmul.f32 %v1825_v8, %v659_v63  ;;  %v666_v49 = vmul.f32 %v1828_v9, %v659_v63  ;;  %v3809_v3 = vunpack.c.h.bf16 %v3165_v33 }
  0x8f   : >> { %v3810_v26 = vunpack.c.l.bf16 %v3168_v34  ;;  %v3811_v6 = vunpack.c.h.bf16 %v3168_v34  ;;  %v3812_v18 = vunpack.c.l.bf16 %v3173_v5  ;;  %v3813_v37 = vunpack.c.h.bf16 %v3173_v5 }
  0x90   : >> { %v667_v4 = vmul.f32 %v3809_v3, %v659_v63  ;;  %v672_v8 = vmul.f32 %v1840_v58, %v659_v63  ;;  %v673_v28 = vmul.f32 %v1841_v1, %v659_v63  ;;  %v674_v9 = vmul.f32 %v1844_v62, %v659_v63  ;;  %v3271_v58 = vld [vmem:[%s2986_s12 + $0x140] sm:$0xff]  }
  0x91   : >> { %v668_v44 = vmul.f32 %v3810_v26, %v659_v63  ;;  %v669_v35 = vmul.f32 %v3811_v6, %v659_v63  ;;  %v670_v7 = vmul.f32 %v3812_v18, %v659_v63  ;;  %v671_v19 = vmul.f32 %v3813_v37, %v659_v63 }
  0x92   : >> { %v675_v54 = vmul.f32 %v1845_v2, %v659_v63  ;;  %v676_v33 = vadd.f32 %v660_v13, %v604_v16  ;;  %v677_v3 = vadd.f32 %v661_v42, %v605_v57  ;;  %v678_v26 = vadd.f32 %v662_v50, %v606_v41  ;;  %v3274_v2 = vld [vmem:[%s2986_s12 + $0x148] sm:$0xff]   ;;  %v3281_v63 = vld [vmem:[%s2986_s12 + $0x158] sm:$0xff]   ;;  %v2019_v42 = vld [vmem:[%s2986_s12 + $0x170] sm:$0xff]  }
  0x93   : >> { %v679_v55 = vadd.f32 %v663_v36, %v607_v11  ;;  %v680_v34 = vadd.f32 %v664_v52, %v608_v59  ;;  %v730_v6 = vsub.s32 4, %v3033_v40  ;;  %v681_v51 = vadd.f32 %v665_v14, %v609_v30  ;;  %v3277_v11 = vld [vmem:[%s2986_s12 + $0x150] sm:$0xff]  }
  0x94   : >> { %v682_v18 = vadd.f32 %v666_v49, %v610_v12  ;;  %v683_v5 = vadd.f32 %v667_v4, %v611_v29  ;;  %v684_v37 = vadd.f32 %v668_v44, %v612_v25  ;;  %v685_v1 = vadd.f32 %v669_v35, %v613_v27  ;;  %v3284_v29 = vld [vmem:[%s2986_s12 + $0x160] sm:$0xff]  }
  0x95   : >> { %v686_v16 = vadd.f32 %v670_v7, %v614_v31  ;;  %v687_v62 = vadd.f32 %v671_v19, %v615_v60  ;;  %v688_v57 = vadd.f32 %v672_v8, %v616_v61  ;;  %v689_v41 = vadd.f32 %v673_v28, %v617_v20  ;;  %v3289_v60 = vld [vmem:[%s2986_s12 + $0x168] sm:$0xff]  }
  0x96   : >> { %v690_v59 = vadd.f32 %v674_v9, %v618_v21  ;;  %v691_v30 = vadd.f32 %v675_v54, %v619_v53  ;;  %v731_v12 = vrot.slane %v3048_v48, %v730_v6  ;;  %v1876_v25 = vunpack.c.l.bf16 %v2012_v45 }
  0x97   : >> { %v1877_v13 = vunpack.c.h.bf16 %v2012_v45  ;;  %v1880_v27 = vunpack.c.l.bf16 %v3271_v58  ;;  %v1881_v31 = vunpack.c.h.bf16 %v3271_v58  ;;  %v1884_v61 = vunpack.c.l.bf16 %v3274_v2 }
  0x98   : >> { %v1885_v20 = vunpack.c.h.bf16 %v3274_v2  ;;  %v1888_v21 = vunpack.c.l.bf16 %v3277_v11  ;;  %v1889_v53 = vunpack.c.h.bf16 %v3277_v11  ;;  %v1892_v54 = vunpack.c.l.bf16 %v3281_v63 }
  0x99   : >> { %v1893_v28 = vunpack.c.h.bf16 %v3281_v63  ;;  %v732_v35 = vmul.f32 %v1848_v38, %v731_v12  ;;  %v733_v44 = vmul.f32 %v1849_v22, %v731_v12  ;;  %v734_v52 = vmul.f32 %v1852_v17, %v731_v12 }
  0x9a   : >> { %v735_v14 = vmul.f32 %v1853_v23, %v731_v12  ;;  %v736_v49 = vmul.f32 %v1856_v10, %v731_v12  ;;  %v737_v4 = vmul.f32 %v1857_v39, %v731_v12  ;;  %v738_v32 = vmul.f32 %v1860_v43, %v731_v12 }
  0x9b   : >> { %v3814_v38 = vunpack.c.h.bf16 %v3218_v24  ;;  %v3815_v7 = vunpack.c.l.bf16 %v3222_v56  ;;  %v3816_v17 = vunpack.c.h.bf16 %v3222_v56  ;;  %v3817_v23 = vunpack.c.l.bf16 %v3225_v0 }
  0x9c   : >> { %v3818_v10 = vunpack.c.h.bf16 %v3225_v0  ;;  %v3819_v39 = vunpack.c.l.bf16 %v3232_v15  ;;  %v3820_v24 = vunpack.c.h.bf16 %v3232_v15  ;;  %v746_v6 = vmul.f32 %v1876_v25, %v731_v12  ;;  %v3333_v25 = vld [vmem:[%s2986_s12 + $0x180] sm:$0xff]  }
  0x9d   : >> { %v739_v22 = vmul.f32 %v3814_v38, %v731_v12  ;;  %v740_v19 = vmul.f32 %v3815_v7, %v731_v12  ;;  %v741_v46 = vmul.f32 %v3816_v17, %v731_v12  ;;  %v742_v8 = vmul.f32 %v3817_v23, %v731_v12 }
  0x9e   : >> { %v743_v47 = vmul.f32 %v3818_v10, %v731_v12  ;;  %v744_v43 = vmul.f32 %v3819_v39, %v731_v12  ;;  %v745_v9 = vmul.f32 %v3820_v24, %v731_v12  ;;  %v747_v38 = vmul.f32 %v1877_v13, %v731_v12  ;;  %v2020_v39 = vld [vmem:[%s2986_s12 + $0x178] sm:$0xff]  }
  0x9f   : >> { %v748_v36 = vadd.f32 %v732_v35, %v676_v33  ;;  %v749_v7 = vadd.f32 %v733_v44, %v677_v3  ;;  %v750_v56 = vadd.f32 %v734_v52, %v678_v26  ;;  %v751_v17 = vadd.f32 %v735_v14, %v679_v55  ;;  %v3336_v55 = vld [vmem:[%s2986_s12 + $0x188] sm:$0xff]   ;;  %v3356_v52 = vld [vmem:[%s2986_s12 + $0x1b0] sm:$0xff]  }
  0xa0   : >> { %v752_v50 = vadd.f32 %v736_v49, %v680_v34  ;;  %v753_v23 = vadd.f32 %v737_v4, %v681_v51  ;;  %v754_v0 = vadd.f32 %v738_v32, %v682_v18  ;;  %v755_v10 = vadd.f32 %v739_v22, %v683_v5  ;;  %v3339_v5 = vld [vmem:[%s2986_s12 + $0x190] sm:$0xff]   ;;  %v2028_v4 = vld [vmem:[%s2986_s12 + $0x1b8] sm:$0xff]  }
  0xa1   : >> { %v756_v45 = vadd.f32 %v740_v19, %v684_v37  ;;  %v802_v15 = vsub.s32 5, %v3033_v40  ;;  %v757_v24 = vadd.f32 %v741_v46, %v685_v1  ;;  %v758_v12 = vadd.f32 %v742_v8, %v686_v16  ;;  %v3342_v37 = vld [vmem:[%s2986_s12 + $0x198] sm:$0xff]  }
  0xa2   : >> { %v759_v33 = vadd.f32 %v743_v47, %v687_v62  ;;  %v760_v3 = vadd.f32 %v744_v43, %v688_v57  ;;  %v761_v51 = vadd.f32 %v745_v9, %v689_v41  ;;  %v762_v26 = vadd.f32 %v746_v6, %v690_v59  ;;  %v3346_v62 = vld [vmem:[%s2986_s12 + $0x1a0] sm:$0xff]   ;;  %v3349_v57 = vld [vmem:[%s2986_s12 + $0x1a8] sm:$0xff]  }
  0xa3   : >> { %v763_v34 = vadd.f32 %v747_v38, %v691_v30  ;;  %v1904_v18 = vunpack.c.l.bf16 %v2019_v42  ;;  %v1905_v13 = vunpack.c.h.bf16 %v2019_v42  ;;  %v1908_v1 = vunpack.c.l.bf16 %v2020_v39 }
  0xa4   : >> { %v1909_v35 = vunpack.c.h.bf16 %v2020_v39  ;;  %v803_v16 = vrot.slane %v3048_v48, %v802_v15  ;;  %v1912_v44 = vunpack.c.l.bf16 %v3333_v25  ;;  %v1913_v41 = vunpack.c.h.bf16 %v3333_v25 }
  0xa5   : >> { %v1916_v59 = vunpack.c.l.bf16 %v3336_v55  ;;  %v1917_v30 = vunpack.c.h.bf16 %v3336_v55  ;;  %v1920_v42 = vunpack.c.l.bf16 %v3339_v5  ;;  %v1921_v14 = vunpack.c.h.bf16 %v3339_v5 }
  0xa6   : >> { %v1924_v49 = vunpack.c.l.bf16 %v3342_v37  ;;  %v804_v8 = vmul.f32 %v1880_v27, %v803_v16  ;;  %v805_v47 = vmul.f32 %v1881_v31, %v803_v16  ;;  %v806_v6 = vmul.f32 %v1884_v61, %v803_v16 }
  0xa7   : >> { %v807_v38 = vmul.f32 %v1885_v20, %v803_v16  ;;  %v808_v39 = vmul.f32 %v1888_v21, %v803_v16  ;;  %v809_v15 = vmul.f32 %v1889_v53, %v803_v16  ;;  %v810_v58 = vmul.f32 %v1892_v54, %v803_v16 }
  0xa8   : >> { %v811_v27 = vmul.f32 %v1893_v28, %v803_v16  ;;  %v3821_v31 = vunpack.c.l.bf16 %v3284_v29  ;;  %v3822_v61 = vunpack.c.h.bf16 %v3284_v29  ;;  %v3823_v2 = vunpack.c.l.bf16 %v3289_v60 }
  0xa9   : >> { %v3824_v21 = vunpack.c.h.bf16 %v3289_v60  ;;  %v816_v53 = vmul.f32 %v1904_v18, %v803_v16  ;;  %v817_v46 = vmul.f32 %v1905_v13, %v803_v16  ;;  %v818_v54 = vmul.f32 %v1908_v1, %v803_v16  ;;  %v3395_v18 = vld [vmem:[%s2986_s12 + $0x1c0] sm:$0xff]  }
  0xaa   : >> { %v812_v9 = vmul.f32 %v3821_v31, %v803_v16  ;;  %v813_v43 = vmul.f32 %v3822_v61, %v803_v16  ;;  %v814_v20 = vmul.f32 %v3823_v2, %v803_v16  ;;  %v819_v19 = vmul.f32 %v1909_v35, %v803_v16  ;;  %v3398_v35 = vld [vmem:[%s2986_s12 + $0x1c8] sm:$0xff]  }
  0xab   : >> { %v815_v11 = vmul.f32 %v3824_v21, %v803_v16  ;;  %v820_v63 = vadd.f32 %v804_v8, %v748_v36  ;;  %v821_v28 = vadd.f32 %v805_v47, %v749_v7  ;;  %v822_v31 = vadd.f32 %v806_v6, %v750_v56  ;;  %v3401_v56 = vld [vmem:[%s2986_s12 + $0x1d0] sm:$0xff]   ;;  %v3405_v16 = vld [vmem:[%s2986_s12 + $0x1d8] sm:$0xff]  }
  0xac   : >> { %v823_v22 = vadd.f32 %v807_v38, %v751_v17  ;;  %v824_v29 = vadd.f32 %v808_v39, %v752_v50  ;;  %v874_v61 = vsub.s32 6, %v3033_v40  ;;  %v825_v32 = vadd.f32 %v809_v15, %v753_v23 }
  0xad   : >> { %v826_v2 = vadd.f32 %v810_v58, %v754_v0  ;;  %v827_v60 = vadd.f32 %v811_v27, %v755_v10  ;;  %v828_v21 = vadd.f32 %v812_v9, %v756_v45  ;;  %v829_v13 = vadd.f32 %v813_v43, %v757_v24  ;;  %v3408_v45 = vld [vmem:[%s2986_s12 + $0x1e0] sm:$0xff]  }
  0xae   : >> { %v830_v36 = vadd.f32 %v814_v20, %v758_v12  ;;  %v831_v1 = vadd.f32 %v815_v11, %v759_v33  ;;  %v832_v7 = vadd.f32 %v816_v53, %v760_v3  ;;  %v833_v50 = vadd.f32 %v817_v46, %v761_v51  ;;  %v3413_v33 = vld [vmem:[%s2986_s12 + $0x1e8] sm:$0xff]  }
  0xaf   : >> { %v834_v17 = vadd.f32 %v818_v54, %v762_v26  ;;  %v835_v23 = vadd.f32 %v819_v19, %v763_v34  ;;  %v875_v0 = vrot.slane %v3048_v48, %v874_v61  ;;  %v1940_v10 = vunpack.c.l.bf16 %v2028_v4 }
  0xb0   : >> { %v1941_v8 = vunpack.c.h.bf16 %v2028_v4  ;;  %v1944_v24 = vunpack.c.l.bf16 %v3395_v18  ;;  %v1945_v12 = vunpack.c.h.bf16 %v3395_v18  ;;  %v1948_v3 = vunpack.c.l.bf16 %v3398_v35 }
  0xb1   : >> { %v1949_v51 = vunpack.c.h.bf16 %v3398_v35  ;;  %v1952_v26 = vunpack.c.l.bf16 %v3401_v56  ;;  %v1953_v34 = vunpack.c.h.bf16 %v3401_v56  ;;  %v1956_v19 = vunpack.c.l.bf16 %v3405_v16 }
  0xb2   : >> { %v1957_v46 = vunpack.c.h.bf16 %v3405_v16  ;;  %v1960_v4 = vunpack.c.l.bf16 %v3408_v45  ;;  %v1961_v47 = vunpack.c.h.bf16 %v3408_v45  ;;  %v876_v43 = vmul.f32 %v1912_v44, %v875_v0 }
  0xb3   : >> { %v877_v9 = vmul.f32 %v1913_v41, %v875_v0  ;;  %v1964_v6 = vunpack.c.l.bf16 %v3413_v33  ;;  %v1965_v38 = vunpack.c.h.bf16 %v3413_v33  ;;  %v878_v39 = vmul.f32 %v1916_v59, %v875_v0 }
  0xb4   : >> { %v879_v15 = vmul.f32 %v1917_v30, %v875_v0  ;;  %v880_v58 = vmul.f32 %v1920_v42, %v875_v0  ;;  %v881_v27 = vmul.f32 %v1921_v14, %v875_v0  ;;  %v882_v25 = vmul.f32 %v1924_v49, %v875_v0 }
  0xb5   : >> { %v3825_v44 = vunpack.c.h.bf16 %v3342_v37  ;;  %v3826_v20 = vunpack.c.l.bf16 %v3346_v62  ;;  %v3827_v59 = vunpack.c.h.bf16 %v3346_v62  ;;  %v3828_v55 = vunpack.c.l.bf16 %v3349_v57 }
  0xb6   : >> { %v3829_v42 = vunpack.c.h.bf16 %v3349_v57  ;;  %v3830_v14 = vunpack.c.l.bf16 %v3356_v52  ;;  %v3831_v37 = vunpack.c.h.bf16 %v3356_v52  ;;  %v890_v61 = vmul.f32 %v1940_v10, %v875_v0  ;;  %v2035_v57 = vld [vmem:[%s2986_s12 + $0x1f0] sm:$0xff]  }
  0xb7   : >> { %v883_v41 = vmul.f32 %v3825_v44, %v875_v0  ;;  %v884_v11 = vmul.f32 %v3826_v20, %v875_v0  ;;  %v885_v53 = vmul.f32 %v3827_v59, %v875_v0  ;;  %v886_v30 = vmul.f32 %v3828_v55, %v875_v0  ;;  %v2036_v55 = vld [vmem:[%s2986_s12 + $0x1f8] sm:$0xff]  }
  0xb8   : >> { %v887_v5 = vmul.f32 %v3829_v42, %v875_v0  ;;  %v888_v49 = vmul.f32 %v3830_v14, %v875_v0  ;;  %v889_v54 = vmul.f32 %v3831_v37, %v875_v0  ;;  %v891_v18 = vmul.f32 %v1941_v8, %v875_v0 }
  0xb9   : >> { %v892_v35 = vadd.f32 %v876_v43, %v820_v63  ;;  %v893_v56 = vadd.f32 %v877_v9, %v821_v28  ;;  %v894_v62 = vadd.f32 %v878_v39, %v822_v31  ;;  %v895_v16 = vadd.f32 %v879_v15, %v823_v22  ;;  %v3832_v63 = vld [vmem:[#allocation17_spill] sm:$0xff] }
  0xba   : >> { %v896_v45 = vadd.f32 %v880_v58, %v824_v29  ;;  %v897_v33 = vadd.f32 %v881_v27, %v825_v32  ;;  %v898_v44 = vadd.f32 %v882_v25, %v826_v2  ;;  %v899_v20 = vadd.f32 %v883_v41, %v827_v60 }
  0xbb   : >> { %v900_v59 = vadd.f32 %v884_v11, %v828_v21  ;;  %v946_v42 = vsub.s32 7, %v3033_v40  ;;  %v901_v48 = vadd.f32 %v885_v53, %v829_v13  ;;  %v902_v14 = vadd.f32 %v886_v30, %v830_v36 }
  0xbc   : >> { %v903_v52 = vadd.f32 %v887_v5, %v831_v1  ;;  %v904_v37 = vadd.f32 %v888_v49, %v832_v7  ;;  %v905_v10 = vadd.f32 %v889_v54, %v833_v50  ;;  %v906_v0 = vadd.f32 %v890_v61, %v834_v17 }
  0xbd   : >> { %v907_v8 = vadd.f32 %v891_v18, %v835_v23  ;;  %v947_v28 = vrot.slane %v3832_v63, %v946_v42  ;;  %v1968_v31 = vunpack.c.l.bf16 %v2035_v57  ;;  %v1969_v22 = vunpack.c.h.bf16 %v2035_v57  ;;  %v995_v18 = vld [vmem:[%s2897_s10 + $0x68] sm:$0xff] (%p3486_p8)  ;;  %v982_v57 = vld [vmem:[%s2897_s10] sm:$0xff] (%p3486_p8) }
  0xbe   : >> { %v1972_v29 = vunpack.c.l.bf16 %v2036_v55  ;;  %v1973_v32 = vunpack.c.h.bf16 %v2036_v55  ;;  %v3862_v55 = vlaneseq (%p3486_p8) }
  0xbf   : >> { %v948_v2 = vmul.f32 %v1944_v24, %v947_v28  ;;  %v949_v60 = vmul.f32 %v1945_v12, %v947_v28  ;;  %v950_v21 = vmul.f32 %v1948_v3, %v947_v28  ;;  %v951_v43 = vmul.f32 %v1949_v51, %v947_v28 }
  0xc0   : >> { %v952_v9 = vmul.f32 %v1952_v26, %v947_v28  ;;  %v953_v39 = vmul.f32 %v1953_v34, %v947_v28  ;;  %v954_v40 = vmul.f32 %v1956_v19, %v947_v28  ;;  %v955_v13 = vmul.f32 %v1957_v46, %v947_v28 }
  0xc1   : >> { %v956_v36 = vmul.f32 %v1960_v4, %v947_v28  ;;  %v957_v1 = vmul.f32 %v1961_v47, %v947_v28  ;;  %v958_v7 = vmul.f32 %v1964_v6, %v947_v28  ;;  %v959_v50 = vmul.f32 %v1965_v38, %v947_v28 }
  0xc2   : >> { %v960_v17 = vmul.f32 %v1968_v31, %v947_v28  ;;  %v961_v23 = vmul.f32 %v1969_v22, %v947_v28  ;;  %v962_v15 = vmul.f32 %v1972_v29, %v947_v28  ;;  %v963_v58 = vmul.f32 %v1973_v32, %v947_v28 }
  0xc3   : >> { %v964_v27 = vadd.f32 %v948_v2, %v892_v35   ;;  %v3457_v2 = vadd.f32 %v949_v60, %v893_v56   ;;  %v3459_v3 = vadd.f32 %v950_v21, %v894_v62   ;;  %v3461_v4 = vadd.f32 %v951_v43, %v895_v16   ;;  %v996_v56 = vld [vmem:[%s2897_s10 + $0x70] sm:$0xff] (%p3486_p8)  ;;  %v989_v62 = vld [vmem:[%s2897_s10 + $0x38] sm:$0xff] (%p3486_p8) }
  0xc4   : >> { %v3463_v5 = vadd.f32 %v952_v9, %v896_v45   ;;  %v3465_v6 = vadd.f32 %v953_v39, %v897_v33   ;;  %v3467_v12 = vadd.f32 %v954_v40, %v898_v44   ;;  %v3469_v19 = vadd.f32 %v955_v13, %v899_v20   ;;  %v987_v45 = vld [vmem:[%s2897_s10 + $0x28] sm:$0xff] (%p3486_p8)  ;;  %v986_v33 = vld [vmem:[%s2897_s10 + $0x20] sm:$0xff] (%p3486_p8)  ;;  %v985_v44 = vld [vmem:[%s2897_s10 + $0x18] sm:$0xff] (%p3486_p8) }
  0xc5   : >> { %v3833_v25 = vmov %v3457_v2  ;;  %v3834_v24 = vmov %v3459_v3  ;;  %v3835_v41 = vmov %v3461_v4  ;;  %v972_v46 = vadd.f32 %v956_v36, %v900_v59   ;;  %2101 = vmatprep.mubr.f32.mxu0 (%p3486_p8), %v964_v27  ;;  %v984_v20 = vld [vmem:[%s2897_s10 + $0x10] sm:$0xff] (%p3486_p8)  ;;  %v983_v59 = vld [vmem:[%s2897_s10 + $0x8] sm:$0xff] (%p3486_p8) }
  0xc6   : >> { %v3836_v51 = vmov %v3463_v5  ;;  %v3837_v26 = vmov %v3465_v6  ;;  %v3838_v34 = vmov %v3467_v12  ;;  %v3471_v47 = vadd.f32 %v957_v1, %v901_v48   ;;  %v997_v48 = vld [vmem:[%s2897_s10 + $0x78] sm:$0xff] (%p3486_p8)  ;;  %v1095_v39 = vld [vmem:[%s2874_s25 + $0x8] sm:$0xff] (%p3486_p8) }
  0xc7   : >> { %v3473_v11 = vadd.f32 %v958_v7, %v902_v14   ;;  %v3475_v12 = vadd.f32 %v959_v50, %v903_v52   ;;  %v3477_v13 = vadd.f32 %v960_v17, %v904_v37   ;;  %v3479_v14 = vadd.f32 %v961_v23, %v905_v10   ;;  %2113 = vmatprep.mubr.f32.mxu1 (%p3486_p8), %v972_v46  ;;  %v1103_v40 = vld [vmem:[%s2874_s25 + $0x48] sm:$0xff] (%p3486_p8) }
  0xc8   : >> { %v3481_v15 = vadd.f32 %v962_v15, %v906_v0   ;;  %v3483_v16 = vadd.f32 %v963_v58, %v907_v8   ;;  %v3852_v10 = vmov %v3471_v47  ;;  %v3853_v9 = vmov %v972_v46  ;;  %v1097_v58 = vld [vmem:[%s2874_s25 + $0x18] sm:$0xff] (%p3486_p8) }
  0xc9   : >> { %v3839_v38 = vmov %v3473_v11  ;;  %v3840_v53 = vmov %v3475_v12  ;;  %v3841_v30 = vmov %v3477_v13  ;;  %v3842_v49 = vmov %v3479_v14  ;;  %384 = sbr.rel (!%p3486_p8) target bundleno = 94 (0x5e), region = 128 }
  0xca   : >> { %v3843_v54 = vmov %v3481_v15  ;;  %v3844_v61 = vmov %v3483_v16  ;;  %v3848_v14 = vmov %v3842_v49  ;;  %v3849_v13 = vmov %v3841_v30 }
  0xcb   : >> { %v3846_v16 = vmov %v3844_v61  ;;  %v3847_v15 = vmov %v3843_v54  ;;  %v3850_v12 = vmov %v3840_v53  ;;  %v3851_v11 = vmov %v3839_v38 }
  0xcc   : >> { %v3854_v8 = vmov %v3469_v19  ;;  %v3855_v7 = vmov %v3838_v34  ;;  %v3856_v6 = vmov %v3837_v26  ;;  %v3857_v5 = vmov %v3836_v51  ;;  %v991_v11 = vld [vmem:[%s2897_s10 + $0x48] sm:$0xff] (%p3486_p8)  ;;  %v988_v16 = vld [vmem:[%s2897_s10 + $0x30] sm:$0xff] (%p3486_p8) }
  0xcd   : >> { %v3858_v4 = vmov %v3835_v41  ;;  %v3859_v3 = vmov %v3834_v24  ;;  %v3860_v2 = vmov %v3833_v25  ;;  %v3861_v1 = vmov %v964_v27  ;;  %v992_v6 = vld [vmem:[%s2897_s10 + $0x50] sm:$0xff] (%p3486_p8)  ;;  %v990_v5 = vld [vmem:[%s2897_s10 + $0x40] sm:$0xff] (%p3486_p8)  ;;  %v1105_v27 = vld [vmem:[%s2874_s25 + $0x58] sm:$0xff] (%p3486_p8) }
  0xce   : > { %v2692_v35 = vmov 0   ;;  %v994_v3 = vld [vmem:[%s2897_s10 + $0x60] sm:$0xff]  ;;  %v993_v4 = vld [vmem:[%s2897_s10 + $0x58] sm:$0xff]  ;;  %v3557_v42 = vand.u32 127, %v3862_v55  ;;  %v2693_v37 = vmov 1.0   ;;  %v1104_v12 = vld [vmem:[%s2874_s25 + $0x50] sm:$0xff] }
  0xcf   : > { %2376 = vset.pattern.permute.xlu1 %v2692_v35  ;;  %2375 = vset.pattern.permute.xlu0 %v2692_v35  ;;  %v1094_v1 = vld [vmem:[%s2874_s25] sm:$0xff] }
  0xd0   : > { %1044 = vperm.xlu0 %2375, %v997_v48   ;;  %1038 = vperm.xlu1 %2376, %v995_v18   ;;  %v1102_v7 = vld [vmem:[%s2874_s25 + $0x40] sm:$0xff] }
  0xd1   : > { %v1098_v48 = vld [vmem:[%s2874_s25 + $0x20] sm:$0xff] }
  0xd2   : > { %v1106_v18 = vld [vmem:[%s2874_s25 + $0x60] sm:$0xff] }
  0xd4   : > { %1041 = vperm.xlu0 %2375, %v996_v56   ;;  %1035 = vperm.xlu1 %2376, %v994_v3  }
  0xd8   : > { %1032 = vperm.xlu0 %2375, %v993_v4   ;;  %1029 = vperm.xlu1 %2376, %v992_v6   ;;  %v1101_v6 = vld [vmem:[%s2874_s25 + $0x38] sm:$0xff] }
  0xdc   : > { %1026 = vperm.xlu0 %2375, %v991_v11   ;;  %1023 = vperm.xlu1 %2376, %v990_v5   ;;  %v1109_v11 = vld [vmem:[%s2874_s25 + $0x78] sm:$0xff] }
  0xe0   : > { %1020 = vperm.xlu0 %2375, %v989_v62   ;;  %1017 = vperm.xlu1 %2376, %v988_v16  }
  0xe4   : > { %1014 = vperm.xlu0 %2375, %v987_v45   ;;  %1011 = vperm.xlu1 %2376, %v986_v33   ;;  %v1100_v33 = vld [vmem:[%s2874_s25 + $0x30] sm:$0xff] }
  0xe8   : > { %1008 = vperm.xlu0 %2375, %v985_v44   ;;  %1005 = vperm.xlu1 %2376, %v984_v20   ;;  %v1108_v44 = vld [vmem:[%s2874_s25 + $0x70] sm:$0xff] }
  0xec   : > { %1002 = vperm.xlu0 %2375, %v983_v59   ;;  %999 = vperm.xlu1 %2376, %v982_v57  }
 0x14b   : > { %v1045_v14 = vpop.permute.xlu0 %1044  ;;  %v1039_v52 = vpop.permute.xlu1 %1038 }
 0x14c   : > { %vm1061_vm0 = vcmp.eq.s32.totalorder %v3557_v42, %v1045_v14  ;;  %vm1059_vm2 = vcmp.eq.s32.totalorder %v3557_v42, %v1039_v52 }
 0x14d   : > { %2069 = vmatprep.subr.msk.mxu0 %vm1061_vm0, %v2693_v37  ;;  %2125 = vmatprep.subr.msk.mxu1 %vm1061_vm0, %v2693_v37 }
 0x14e   : > { %2070 = vmatpush3.msk.msra.mxu0 %vm1061_vm0, %v2693_v37  ;;  %2141 = vmatpush3.msk.msra.mxu1 %vm1061_vm0, %v2693_v37 }
 0x14f   : > { %v1042_v10 = vpop.permute.xlu0 %1041  ;;  %v1036_v0 = vpop.permute.xlu1 %1035 }
 0x150   : > { %vm1060_vm1 = vcmp.eq.s32.totalorder %v3557_v42, %v1042_v10  ;;  %vm1058_vm3 = vcmp.eq.s32.totalorder %v3557_v42, %v1036_v0 }
 0x151   : > { %2071 = vmatprep.subr.msk.mxu0 %vm1060_vm1, %v2693_v37  ;;  %2126 = vmatprep.subr.msk.mxu1 %vm1060_vm1, %v2693_v37 }
 0x152   : > { %2072 = vmatpush3.msk.msra.mxu0 %vm1060_vm1, %v2693_v37  ;;  %2142 = vmatpush3.msk.msra.mxu1 %vm1060_vm1, %v2693_v37 }
 0x153   : > { %v1033_v8 = vpop.permute.xlu0 %1032  ;;  %v1030_v63 = vpop.permute.xlu1 %1029  ;;  %2073 = vmatprep.subr.msk.mxu0 %vm1059_vm2, %v2693_v37  ;;  %2127 = vmatprep.subr.msk.mxu1 %vm1059_vm2, %v2693_v37 }
 0x154   : > { %2074 = vmatpush3.msk.msra.mxu0 %vm1059_vm2, %v2693_v37  ;;  %2143 = vmatpush3.msk.msra.mxu1 %vm1059_vm2, %v2693_v37  ;;  %vm1057_vm4 = vcmp.eq.s32.totalorder %v3557_v42, %v1033_v8  ;;  %vm1056_vm5 = vcmp.eq.s32.totalorder %v3557_v42, %v1030_v63 }
 0x155   : > { %2075 = vmatprep.subr.msk.mxu0 %vm1058_vm3, %v2693_v37  ;;  %2128 = vmatprep.subr.msk.mxu1 %vm1058_vm3, %v2693_v37 }
 0x156   : > { %2076 = vmatpush3.msk.msra.mxu0 %vm1058_vm3, %v2693_v37  ;;  %2144 = vmatpush3.msk.msra.mxu1 %vm1058_vm3, %v2693_v37 }
 0x157   : > { %v1027_v28 = vpop.permute.xlu0 %1026  ;;  %v1024_v31 = vpop.permute.xlu1 %1023  ;;  %2077 = vmatprep.subr.msk.mxu0 %vm1057_vm4, %v2693_v37  ;;  %2129 = vmatprep.subr.msk.mxu1 %vm1057_vm4, %v2693_v37 }
 0x158   : > { %2078 = vmatpush3.msk.msra.mxu0 %vm1057_vm4, %v2693_v37  ;;  %2145 = vmatpush3.msk.msra.mxu1 %vm1057_vm4, %v2693_v37  ;;  %vm1055_vm6 = vcmp.eq.s32.totalorder %v3557_v42, %v1027_v28  ;;  %vm1054_vm7 = vcmp.eq.s32.totalorder %v3557_v42, %v1024_v31 }
 0x159   : > { %2079 = vmatprep.subr.msk.mxu0 %vm1056_vm5, %v2693_v37  ;;  %2130 = vmatprep.subr.msk.mxu1 %vm1056_vm5, %v2693_v37 }
 0x15a   : > { %2080 = vmatpush3.msk.msra.mxu0 %vm1056_vm5, %v2693_v37  ;;  %2146 = vmatpush3.msk.msra.mxu1 %vm1056_vm5, %v2693_v37 }
 0x15b   : > { %v1021_v22 = vpop.permute.xlu0 %1020  ;;  %v1018_v29 = vpop.permute.xlu1 %1017  ;;  %2081 = vmatprep.subr.msk.mxu0 %vm1055_vm6, %v2693_v37  ;;  %2131 = vmatprep.subr.msk.mxu1 %vm1055_vm6, %v2693_v37 }
 0x15c   : > { %2082 = vmatpush3.msk.msra.mxu0 %vm1055_vm6, %v2693_v37  ;;  %2147 = vmatpush3.msk.msra.mxu1 %vm1055_vm6, %v2693_v37  ;;  %vm1053_vm8 = vcmp.eq.s32.totalorder %v3557_v42, %v1021_v22  ;;  %vm1052_vm9 = vcmp.eq.s32.totalorder %v3557_v42, %v1018_v29 }
 0x15d   : > { %2083 = vmatprep.subr.msk.mxu0 %vm1054_vm7, %v2693_v37  ;;  %2132 = vmatprep.subr.msk.mxu1 %vm1054_vm7, %v2693_v37 }
 0x15e   : > { %2084 = vmatpush3.msk.msra.mxu0 %vm1054_vm7, %v2693_v37  ;;  %2148 = vmatpush3.msk.msra.mxu1 %vm1054_vm7, %v2693_v37 }
 0x15f   : > { %v1015_v32 = vpop.permute.xlu0 %1014  ;;  %v1012_v2 = vpop.permute.xlu1 %1011  ;;  %2085 = vmatprep.subr.msk.mxu0 %vm1053_vm8, %v2693_v37  ;;  %2133 = vmatprep.subr.msk.mxu1 %vm1053_vm8, %v2693_v37 }
 0x160   : > { %2086 = vmatpush3.msk.msra.mxu0 %vm1053_vm8, %v2693_v37  ;;  %2149 = vmatpush3.msk.msra.mxu1 %vm1053_vm8, %v2693_v37  ;;  %vm1051_vm10 = vcmp.eq.s32.totalorder %v3557_v42, %v1015_v32  ;;  %vm1050_vm11 = vcmp.eq.s32.totalorder %v3557_v42, %v1012_v2 }
 0x161   : > { %2087 = vmatprep.subr.msk.mxu0 %vm1052_vm9, %v2693_v37  ;;  %2134 = vmatprep.subr.msk.mxu1 %vm1052_vm9, %v2693_v37 }
 0x162   : > { %2088 = vmatpush3.msk.msra.mxu0 %vm1052_vm9, %v2693_v37  ;;  %2150 = vmatpush3.msk.msra.mxu1 %vm1052_vm9, %v2693_v37 }
 0x163   : > { %v1009_v60 = vpop.permute.xlu0 %1008  ;;  %v1006_v21 = vpop.permute.xlu1 %1005  ;;  %2089 = vmatprep.subr.msk.mxu0 %vm1051_vm10, %v2693_v37  ;;  %2135 = vmatprep.subr.msk.mxu1 %vm1051_vm10, %v2693_v37 }
 0x164   : > { %2090 = vmatpush3.msk.msra.mxu0 %vm1051_vm10, %v2693_v37  ;;  %2151 = vmatpush3.msk.msra.mxu1 %vm1051_vm10, %v2693_v37  ;;  %vm1049_vm12 = vcmp.eq.s32.totalorder %v3557_v42, %v1009_v60  ;;  %vm1048_vm13 = vcmp.eq.s32.totalorder %v3557_v42, %v1006_v21 }
 0x165   : > { %2091 = vmatprep.subr.msk.mxu0 %vm1050_vm11, %v2693_v37  ;;  %2136 = vmatprep.subr.msk.mxu1 %vm1050_vm11, %v2693_v37 }
 0x166   : > { %2092 = vmatpush3.msk.msra.mxu0 %vm1050_vm11, %v2693_v37  ;;  %2152 = vmatpush3.msk.msra.mxu1 %vm1050_vm11, %v2693_v37 }
 0x167   : > { %v1003_v43 = vpop.permute.xlu0 %1002  ;;  %2093 = vmatprep.subr.msk.mxu0 %vm1049_vm12, %v2693_v37  ;;  %2137 = vmatprep.subr.msk.mxu1 %vm1049_vm12, %v2693_v37  ;;  %v1000_v9 = vpop.permute.xlu1 %999 }
 0x168   : > { %2094 = vmatpush3.msk.msra.mxu0 %vm1049_vm12, %v2693_v37  ;;  %2153 = vmatpush3.msk.msra.mxu1 %vm1049_vm12, %v2693_v37  ;;  %vm1047_vm14 = vcmp.eq.s32.totalorder %v3557_v42, %v1003_v43  ;;  %vm1046_vm15 = vcmp.eq.s32.totalorder %v3557_v42, %v1000_v9 }
 0x169   : > { %2095 = vmatprep.subr.msk.mxu0 %vm1048_vm13, %v2693_v37  ;;  %2138 = vmatprep.subr.msk.mxu1 %vm1048_vm13, %v2693_v37 }
 0x16a   : > { %2096 = vmatpush3.msk.msra.mxu0 %vm1048_vm13, %v2693_v37  ;;  %2154 = vmatpush3.msk.msra.mxu1 %vm1048_vm13, %v2693_v37 }
 0x16b   : > { %2097 = vmatprep.subr.msk.mxu0 %vm1047_vm14, %v2693_v37  ;;  %2139 = vmatprep.subr.msk.mxu1 %vm1047_vm14, %v2693_v37 }
 0x16c   : > { %2098 = vmatpush3.msk.msra.mxu0 %vm1047_vm14, %v2693_v37  ;;  %2155 = vmatpush3.msk.msra.mxu1 %vm1047_vm14, %v2693_v37 }
 0x16d   : > { %2099 = vmatprep.subr.msk.mxu0 %vm1046_vm15, %v2693_v37  ;;  %2140 = vmatprep.subr.msk.mxu1 %vm1046_vm15, %v2693_v37 }
 0x16e   : > { %2100 = vmatpush3.msk.msra.mxu0 %vm1046_vm15, %v2693_v37  ;;  %2156 = vmatpush3.msk.msra.mxu1 %vm1046_vm15, %v2693_v37 }
 0x16f   : > { %2102 = vmatmul.mubr.f32.vlgmr.msra.gmra.mxu0 %v3833_v25  ;;  %2114 = vmatmul.mubr.f32.vlgmr.msra.gmra.mxu1 %v3471_v47 }
 0x170   : > { %2104 = vmatprep.mubr.f32.mxu0 %v3834_v24  ;;  %2116 = vmatprep.mubr.f32.mxu1 %v3839_v38  ;;  %v1099_v38 = vld [vmem:[%s2874_s25 + $0x28] sm:$0xff] }
 0x173   : > { %2105 = vmatmul.mubr.f32.gmra.mxu0 %v3835_v41  ;;  %2117 = vmatmul.mubr.f32.gmra.mxu1 %v3840_v53  ;;  %v1107_v53 = vld [vmem:[%s2874_s25 + $0x68] sm:$0xff] }
 0x174   : > { %2107 = vmatprep.mubr.f32.mxu0 %v3836_v51  ;;  %2119 = vmatprep.mubr.f32.mxu1 %v3841_v30 }
 0x177   : > { %2108 = vmatmul.mubr.f32.gmra.mxu0 %v3837_v26  ;;  %2120 = vmatmul.mubr.f32.gmra.mxu1 %v3842_v49  ;;  %v1096_v26 = vld [vmem:[%s2874_s25 + $0x10] sm:$0xff] }
 0x178   : > { %2110 = vmatprep.mubr.f32.mxu0 %v3838_v34  ;;  %2122 = vmatprep.mubr.f32.mxu1 %v3843_v54 }
 0x17b   : > { %2111 = vmatmul.mubr.f32.gmra.mxu0 %v3469_v19  ;;  %2123 = vmatmul.mubr.f32.gmra.mxu1 %v3844_v61 }
 0x22f   : > { %v2103_v13 = vpop.f32.mrf.mxu0  ;;  %v2115_v36 = vpop.f32.mrf.mxu1 }
 0x230   : > { %v1256_v50 = vadd.f32 %v2103_v13, %v1095_v39  ;;  %v1264_v17 = vadd.f32 %v2115_v36, %v1103_v40 }
 0x231   : > { %v1176_v23 = vpop.f32.mrf.mxu0  ;;  %v1216_v15 = vpop.f32.mrf.mxu1 }
 0x232   : > { %1272 = vst [vmem:[%s2874_s25 + $0x8] sm:$0xff] %v1256_v50  ;;  %1280 = vst [vmem:[%s2874_s25 + $0x48] sm:$0xff] %v1264_v17  ;;  %v1255_v25 = vadd.f32 %v1176_v23, %v1094_v1  ;;  %v1263_v24 = vadd.f32 %v1216_v15, %v1102_v7 }
 0x233   : > { %v2106_v41 = vpop.f32.mrf.mxu0  ;;  %v2118_v51 = vpop.f32.mrf.mxu1 }
 0x234   : > { %1271 = vst [vmem:[%s2874_s25] sm:$0xff] %v1255_v25  ;;  %1279 = vst [vmem:[%s2874_s25 + $0x40] sm:$0xff] %v1263_v24  ;;  %v1258_v34 = vadd.f32 %v2106_v41, %v1097_v58  ;;  %v1266_v19 = vadd.f32 %v2118_v51, %v1105_v27 }
 0x235   : > { %v1186_v46 = vpop.f32.mrf.mxu0  ;;  %v1226_v47 = vpop.f32.mrf.mxu1 }
 0x236   : > { %1274 = vst [vmem:[%s2874_s25 + $0x18] sm:$0xff] %v1258_v34  ;;  %1282 = vst [vmem:[%s2874_s25 + $0x58] sm:$0xff] %v1266_v19  ;;  %v1257_v30 = vadd.f32 %v1186_v46, %v1096_v26  ;;  %v1265_v49 = vadd.f32 %v1226_v47, %v1104_v12 }
 0x237   : > { %v2109_v54 = vpop.f32.mrf.mxu0  ;;  %v2121_v61 = vpop.f32.mrf.mxu1 }
 0x238   : > { %1273 = vst [vmem:[%s2874_s25 + $0x10] sm:$0xff] %v1257_v30  ;;  %1281 = vst [vmem:[%s2874_s25 + $0x50] sm:$0xff] %v1265_v49  ;;  %v1260_v35 = vadd.f32 %v2109_v54, %v1099_v38  ;;  %v1268_v56 = vadd.f32 %v2121_v61, %v1107_v53 }
 0x239   : > { %v1196_v3 = vpop.f32.mrf.mxu0  ;;  %v1236_v4 = vpop.f32.mrf.mxu1 }
 0x23a   : > { %1276 = vst [vmem:[%s2874_s25 + $0x28] sm:$0xff] %v1260_v35  ;;  %1284 = vst [vmem:[%s2874_s25 + $0x68] sm:$0xff] %v1268_v56  ;;  %v1259_v5 = vadd.f32 %v1196_v3, %v1098_v48  ;;  %v1267_v62 = vadd.f32 %v1236_v4, %v1106_v18 }
 0x23b   : > { %v2112_v16 = vpop.f32.mrf.mxu0  ;;  %v2124_v45 = vpop.f32.mrf.mxu1 }
 0x23c   : > { %1275 = vst [vmem:[%s2874_s25 + $0x20] sm:$0xff] %v1259_v5  ;;  %1283 = vst [vmem:[%s2874_s25 + $0x60] sm:$0xff] %v1267_v62  ;;  %v1262_v20 = vadd.f32 %v2112_v16, %v1101_v6  ;;  %v1270_v59 = vadd.f32 %v2124_v45, %v1109_v11 }
 0x23d   : > { %v1206_v57 = vpop.f32.mrf.mxu0  ;;  %v1246_v55 = vpop.f32.mrf.mxu1 }
 0x23e   : > { %1278 = vst [vmem:[%s2874_s25 + $0x38] sm:$0xff] %v1262_v20  ;;  %1286 = vst [vmem:[%s2874_s25 + $0x78] sm:$0xff] %v1270_v59  ;;  %v1261_v42 = vadd.f32 %v1206_v57, %v1100_v33  ;;  %v1269_v14 = vadd.f32 %v1246_v55, %v1108_v44 }
 0x240   : > { %1277 = vst [vmem:[%s2874_s25 + $0x30] sm:$0xff] %v1261_v42  ;;  %1285 = vst [vmem:[%s2874_s25 + $0x70] sm:$0xff] %v1269_v14 }
 0x241   : > { %2474 = shalt.err (!%p2471_p10)
}
 0x242   : > { %s2475_s11 = scalar_lea.hbm %s3686_s5, 2048  ;;  %s2479_s27 = scalar_lea.hbm %s3744_s4, 4096 }
 0x243   : > { %p2476_p13 = scmp.ne.s32.totalorder %s3686_s5, %s2475_s11  ;;  %p2480_p8 = scmp.lt.s32.totalorder %s3686_s5, %s3744_s4 }
 0x244   : > { %p2481_p2 = scmp.lt.s32.totalorder %s2479_s27, %s2475_s11 }
 0x245   : > { %p2477_p3 = pnand %p2476_p13, %p2777_p9 }
 0x246   : > { %p2482_p4 = por %p2481_p2, %p2480_p8 }
 0x247   : > { %p2478_p0 = pneg %p2477_p3 }
 0x249   : > { %p2483_p5 = pnand %p2482_p4, %p2478_p0 }
 0x24b   : > { %2486 = shalt.err (!%p2483_p5)
}
 0x24c   : > { %s2695_s13 = smov 128   ;;  %s2696_s24 = smov 8  }
 0x24d   : > { %2163 = dma.vmem_to_hbm [thread:$0]  (%p2777_p9), %s3688_s29, 2048, %s3686_s5, %s1288_s18, %s2695_s13, %s2695_s13, %s2696_s24  }
 0x24e PF: > { %s3863_s26 = sld [smem:[#allocation14_spill]]  ;;  %s1316_s12 = sand.u32 1, %s2593_s15  }
 0x24f   : > { %p2176_p6 = pnand %p1528_p12, %p2784_p11  ;;  %s1317_s17 = scalar_lea.sflag [#allocation4], %s1316_s12 }
 0x251   : > { %p2177_p7 = pneg %p2176_p6 }
 0x253   : > { %2588 = dma.done.wait (%p2177_p7), %s1317_s17, 2048  }
 0x254   : > { %2590 = vsyncadd (%p2177_p7), %s1317_s17, 4294965248  ;;  %s23_s20 = sadd.s32 1, %s3863_s26   ;;  %s3864_s14 = sld [smem:[#allocation12_spill]] }
 0x255   : > { %p20_p1 = scmp.ge.s32.totalorder %s23_s20, 4   ;;  %s3865_s17 = sld [smem:[#allocation16_spill]] }
 0x256   : > { %s3866_s18 = sld [smem:[#allocation13_spill]]  ;;  %s3868_s15 = smov %s2597_s16 }
 0x257   : > { %s3867_s19 = sld [smem:[#allocation15_spill]]  ;;  %22 = sbr.rel (!%p20_p1) target bundleno = 11 (0xb), region = 139 }
 0x25a   : > { %s3869_s16 = smov %s3864_s14 }
 0x25c   :  { %1322 = vsyncpa [#allocation3], 1 }
 0x25d   :  { %1324 = vsyncpa [#allocation3 + $0x1], 1 }
 0x25e   :  { %1325 = vsyncpa [#allocation6], 1 }
 0x25f   :  { %1327 = vsyncpa [#allocation6 + $0x1], 1 }
 0x260   :  { %1328 = vsyncpa [#allocation4], 1 }
 0x261   :  { %1330 = vsyncpa [#allocation4 + $0x1], 1 }

</bundles_post_ra>
